<compile_context>
chip_gen: v5e
topology: v5e:2x2
jax: 0.10.0
libtpu: 0.0.40
codegen_flags: <defaults>
</compile_context>

<pallas_src>
import functools

import jax
import jax.numpy as jnp
from jax import lax
from jax.experimental import pallas as pl
from jax.experimental.pallas import tpu as pltpu

# ----------------------------- configuration --------------------------------
B = 2            # batch
C_IN = 4         # in_channels
T = 16           # sequence length
H = 32           # h_channels
D = 16           # out_channels (z_e / z_q dim)
CODEBOOK = 8     # codebook_size
BETA = 0.25      # commitment cost
CONV_KERNELS = (3, 3)
PADDINGS = (1, 1)
POOLINGS = (2, 2)
LN_EPS = 1e-5

FEATURE_ROW_OFF = 8   # aligned sublane offset of the features inside the VMEM buffers


# ------------------------------ fused kernel ---------------------------------
def _fused_encoder_kernel(*refs, layer_cfg, t_seq, off):
    """Whole VQConvEncoder forward in a single kernel invocation.

    refs (in order):
      x (B, C_IN, T)                      NCW input (transpose folded into 1x1 conv)
      w0 (C_IN, H), b0 (1, H)             conv_initial
      [w_i (K, H, H), b_i (1, H)] * L     DownSampleEncBlk convs (tap-major weights)
      w_out (H, D), b_out (1, D), ln_g (1, D), ln_b (1, D), codebook (K_cb, D)
      z_e (B, D), z_q (B, D), loss (1, 1), ppl (1, 1)        -- outputs
      buf_a, buf_b (B, T_BUF, H)                             -- VMEM ping-pong scratch
    """
    n_layers = len(layer_cfg)
    i = 0
    x_ref = refs[i]; i += 1
    w0_ref = refs[i]; i += 1
    b0_ref = refs[i]; i += 1
    conv_refs = refs[i:i + 2 * n_layers]; i += 2 * n_layers
    wout_ref, bout_ref, g_ref, be_ref, cb_ref = refs[i:i + 5]; i += 5
    ze_ref, zq_ref, loss_ref, ppl_ref = refs[i:i + 4]; i += 4
    bufs = (refs[i], refs[i + 1])

    x = x_ref[...]                               # (B, C_IN, T)
    w0 = w0_ref[...]                             # (C_IN, H)
    b0 = b0_ref[...]                             # (1, H)
    bsz = x.shape[0]
    h_ch = w0.shape[1]

    # --- conv_initial: 1x1 conv.  The NCW->NWC transpose is folded into a
    #     transposed-LHS matmul: h0[b, t, o] = sum_c x[b, c, t] * w0[c, o].
    bufs[0][...] = jnp.zeros_like(bufs[0])       # zero rows provide the conv halo
    for b in range(bsz):
        h0 = lax.dot_general(x[b], w0, (((0,), (0,)), ((), ())),
                             preferred_element_type=jnp.float32) + b0   # (T, H)
        bufs[0][b, off:off + t_seq, :] = h0

    # --- DownSampleEncBlk stack: Conv1d(k, pad) -> ReLU -> AvgPool1d(pk).
    #     Layer li's features live in bufs[li % 2] rows [off, off + t_cur);
    #     everything else in the buffer is zero (in-kernel padding).
    t_cur = t_seq
    for li, (ksz, pad, pk) in enumerate(layer_cfg):
        src = bufs[li % 2]
        dst = bufs[(li + 1) % 2]
        w = conv_refs[2 * li][...]               # (ksz, H, H) taps
        bias = conv_refs[2 * li + 1][...]        # (1, H)
        t_out = t_cur + 2 * pad - ksz + 1
        t_pool = t_out // pk                     # truncating pool (matches AvgPool1d)
        dst[...] = jnp.zeros_like(dst)
        for b in range(bsz):
            sb = src[b]                          # (T_BUF, H); zero outside features
            acc = jnp.zeros((t_out, h_ch), jnp.float32)
            for kk in range(ksz):                # small static tap unroll on the MXU
                lo = off - pad + kk
                acc = acc + jnp.dot(sb[lo:lo + t_out, :], w[kk],
                                    preferred_element_type=jnp.float32)
            y = jnp.maximum(acc + bias, 0.0)     # ReLU
            # average pool over time on the VPU (no pooling matmul)
            for j in range(t_pool):
                dst[b, off + j:off + j + 1, :] = jnp.mean(
                    y[j * pk:(j + 1) * pk, :], axis=0, keepdims=True)
        t_cur = t_pool

    # --- head: activation -> mean over time -> Linear -> LayerNorm
    fin = bufs[n_layers % 2]
    row_ids = lax.broadcasted_iota(jnp.int32, (bsz, h_ch), 0)
    h_avg = jnp.zeros((bsz, h_ch), jnp.float32)
    for b in range(bsz):
        hb = jnp.maximum(fin[b][off:off + t_cur, :], 0.0)
        mean_b = jnp.mean(hb, axis=0, keepdims=True)            # (1, H)
        h_avg = h_avg + jnp.where(row_ids == b, mean_b, 0.0)    # place batch row b
    z = jnp.dot(h_avg, wout_ref[...], preferred_element_type=jnp.float32) + bout_ref[...]
    mu = jnp.mean(z, axis=-1, keepdims=True)
    var = jnp.mean((z - mu) ** 2, axis=-1, keepdims=True)
    z_e = (z - mu) * lax.rsqrt(var + LN_EPS) * g_ref[...] + be_ref[...]
    ze_ref[...] = z_e

    # --- VectorQuantizerEMA forward: nearest code, commitment loss, perplexity.
    #     Distances in MXU form ||z||^2 - 2 z.e^T + ||e||^2; dmin comes from the
    #     same `d` used in the tie-breaking comparison below.
    e = cb_ref[...]                                             # (K_cb, D)
    cross = lax.dot_general(z_e, e, (((1,), (1,)), ((), ())),
                            preferred_element_type=jnp.float32)              # (B, K_cb)
    e_sq = lax.dot_general(jnp.ones((1, e.shape[1]), jnp.float32), e * e,
                           (((1,), (1,)), ((), ())),
                           preferred_element_type=jnp.float32)               # (1, K_cb)
    z_sq = jnp.sum(z_e * z_e, axis=-1, keepdims=True)                        # (B, 1)
    d = z_sq - 2.0 * cross + e_sq                                            # (B, K_cb)
    dmin = jnp.min(d, axis=-1, keepdims=True)
    ids = lax.broadcasted_iota(jnp.int32, d.shape, 1)
    first = jnp.min(jnp.where(d == dmin, ids, d.shape[1]), axis=-1, keepdims=True)
    onehot = (ids == first).astype(jnp.float32)                              # (B, K_cb)
    zq = jnp.dot(onehot, e, preferred_element_type=jnp.float32)              # (B, D)
    zq_ref[...] = zq
    # EMA VQ: commitment term only; straight-through forward value equals zq.
    loss_ref[...] = BETA * jnp.mean((zq - z_e) ** 2, keepdims=True)
    avg = jnp.mean(onehot, axis=0, keepdims=True)
    ppl_ref[...] = jnp.exp(-jnp.sum(avg * jnp.log(avg + 1e-10),
                                    axis=-1, keepdims=True))


# ------------------------------ wrapper --------------------------------------
@jax.jit
def vq_conv_encoder_forward(x_bct, params):
    """Matches VQConvEncoder.forward: returns (z_e, z_q, loss, perplexity)."""
    layer_cfg = tuple(zip(CONV_KERNELS, PADDINGS, POOLINGS))
    bsz, _, t_seq = x_bct.shape
    h_ch = params["w0"].shape[1]
    d_out = params["w_out_t"].shape[1]
    max_pad = max(PADDINGS) if PADDINGS else 0
    off = FEATURE_ROW_OFF
    t_buf = -(-(off + t_seq + max_pad) // 8) * 8      # round up to a full sublane tile

    args = [x_bct, params["w0"], params["b0"].reshape(1, h_ch)]
    for w, bb in zip(params["conv_w"], params["conv_b"]):
        args.append(w)                                 # (K, H, H) tap-major
        args.append(bb.reshape(1, h_ch))
    args += [params["w_out_t"], params["b_out"].reshape(1, d_out),
             params["ln_g"].reshape(1, d_out), params["ln_b"].reshape(1, d_out),
             params["codebook"]]

    kernel = functools.partial(_fused_encoder_kernel, layer_cfg=layer_cfg,
                               t_seq=t_seq, off=off)
    vmem = pltpu.MemorySpace.VMEM
    z_e, z_q, loss, ppl = pl.pallas_call(
        kernel,
        out_shape=(
            jax.ShapeDtypeStruct((bsz, d_out), jnp.float32),   # z_e
            jax.ShapeDtypeStruct((bsz, d_out), jnp.float32),   # z_q
            jax.ShapeDtypeStruct((1, 1), jnp.float32),         # loss
            jax.ShapeDtypeStruct((1, 1), jnp.float32),         # perplexity
        ),
        in_specs=[pl.BlockSpec(memory_space=vmem) for _ in args],
        out_specs=tuple(pl.BlockSpec(memory_space=vmem) for _ in range(4)),
        scratch_shapes=[pltpu.VMEM((bsz, t_buf, h_ch), jnp.float32),
                        pltpu.VMEM((bsz, t_buf, h_ch), jnp.float32)],
    )(*args)
    return z_e, z_q, loss[0, 0], ppl[0, 0]


# ------------------------------ reference (plain JAX) ------------------------
def _ref_forward(x_bct, params):
    h = jnp.transpose(x_bct, (0, 2, 1))                     # (B, T, C)

    def conv1d(xx, taps, bias, pad):
        xp = jnp.pad(xx, ((0, 0), (pad, pad), (0, 0)))
        k = taps.shape[0]
        t_out = xp.shape[1] - k + 1
        out = sum(jnp.einsum("btc,cd->btd", xp[:, i:i + t_out], taps[i])
                  for i in range(k))
        return out + bias

    h = conv1d(h, params["w0"][None], params["b0"], 0)
    for ksz, pad, pk, w, bb in zip(CONV_KERNELS, PADDINGS, POOLINGS,
                                   params["conv_w"], params["conv_b"]):
        h = jnp.maximum(conv1d(h, w, bb, pad), 0.0)
        b_, t_, c_ = h.shape
        h = h[:, :(t_ // pk) * pk].reshape(b_, t_ // pk, pk, c_).mean(axis=2)
    h_act = jnp.maximum(h, 0.0)
    h_avg = h_act.mean(axis=1)
    z = h_avg @ params["w_out_t"] + params["b_out"]
    mu = z.mean(-1, keepdims=True)
    var = ((z - mu) ** 2).mean(-1, keepdims=True)
    z_e = (z - mu) / jnp.sqrt(var + LN_EPS) * params["ln_g"] + params["ln_b"]
    e = params["codebook"]
    dist = ((z_e[:, None, :] - e[None, :, :]) ** 2).sum(-1)
    idx = jnp.argmin(dist, axis=-1)
    onehot = jax.nn.one_hot(idx, e.shape[0], dtype=jnp.float32)
    z_q = onehot @ e
    loss = BETA * jnp.mean((z_q - z_e) ** 2)
    avg = onehot.mean(0)
    ppl = jnp.exp(-jnp.sum(avg * jnp.log(avg + 1e-10)))
    return z_e, z_q, loss, ppl


# ------------------------------ main ------------------------------------------
if __name__ == "__main__":
    key = jax.random.PRNGKey(0)
    ks = jax.random.split(key, 10)

    base = {
        # conv_initial: torch weight (H, C_IN, 1) -> layout (C_IN, H)
        "w0": 0.2 * jax.random.normal(ks[0], (C_IN, H), jnp.float32),
        "b0": 0.1 * jax.random.normal(ks[1], (H,), jnp.float32),
        # DownSampleEncBlk convs: torch (H, H, k) -> layout (k, H, H)
        "conv_w": [0.1 * jax.random.normal(ks[2 + i], (k, H, H), jnp.float32)
                   for i, k in enumerate(CONV_KERNELS)],
        "conv_b": [0.05 * jax.random.normal(ks[4 + i], (H,), jnp.float32)
                   for i in range(len(CONV_KERNELS))],
        "ln_g": jnp.ones((D,), jnp.float32),
        "ln_b": jnp.zeros((D,), jnp.float32),
        "codebook": jax.random.normal(ks[6], (CODEBOOK, D), jnp.float32),
    }
    # Module-faithful init: out_linear is explicitly zero-initialized in __init__.
    params_init = dict(base,
                       w_out_t=jnp.zeros((H, D), jnp.float32),
                       b_out=jnp.zeros((D,), jnp.float32))
    # Non-degenerate out_linear so the self-check exercises the full pipeline
    # (conv stack, LayerNorm and VQ) end-to-end, not just the zero fixed point.
    params_rand = dict(base,
                       w_out_t=0.2 * jax.random.normal(ks[7], (H, D), jnp.float32),
                       b_out=0.05 * jax.random.normal(ks[8], (D,), jnp.float32))

    x = jax.random.normal(ks[9], (B, C_IN, T), jnp.float32)   # [B, C, T]

    for p in (params_init, params_rand):
        z_e, z_q, loss, ppl = vq_conv_encoder_forward(x, p)
        jax.block_until_ready((z_e, z_q, loss, ppl))
        ze_r, zq_r, loss_r, ppl_r = _ref_forward(x, p)
        assert jnp.allclose(z_e, ze_r, atol=1e-4, rtol=1e-4)
        assert jnp.allclose(z_q, zq_r, atol=1e-4, rtol=1e-4)
        assert jnp.allclose(loss, loss_r, atol=1e-4, rtol=1e-4)
        assert jnp.allclose(ppl, ppl_r, atol=1e-4, rtol=1e-4)

    print("KERNEL_OK")
</pallas_src>

<mosaic_0001>
module attributes {stable_mosaic.version = 11 : i64} {
  func.func @_fused_encoder_kernel(%arg0: memref<2x4x16xf32, #tpu.memory_space<vmem>>, %arg1: memref<4x32xf32, #tpu.memory_space<vmem>>, %arg2: memref<1x32xf32, #tpu.memory_space<vmem>>, %arg3: memref<3x32x32xf32, #tpu.memory_space<vmem>>, %arg4: memref<1x32xf32, #tpu.memory_space<vmem>>, %arg5: memref<3x32x32xf32, #tpu.memory_space<vmem>>, %arg6: memref<1x32xf32, #tpu.memory_space<vmem>>, %arg7: memref<32x16xf32, #tpu.memory_space<vmem>>, %arg8: memref<1x16xf32, #tpu.memory_space<vmem>>, %arg9: memref<1x16xf32, #tpu.memory_space<vmem>>, %arg10: memref<1x16xf32, #tpu.memory_space<vmem>>, %arg11: memref<8x16xf32, #tpu.memory_space<vmem>>, %arg12: memref<2x16xf32, #tpu.memory_space<vmem>>, %arg13: memref<2x16xf32, #tpu.memory_space<vmem>>, %arg14: memref<1x1xf32, #tpu.memory_space<vmem>>, %arg15: memref<1x1xf32, #tpu.memory_space<vmem>>, %arg16: memref<2x32x32xf32, #tpu.memory_space<vmem>>, %arg17: memref<2x32x32xf32, #tpu.memory_space<vmem>>) attributes {dimension_semantics = [], scalar_prefetch = 0 : i64, scratch_operands = 2 : i64, tpu.core_type = #tpu.core_type<tc>} {
    %c0 = arith.constant 0 : index
    %c0_0 = arith.constant 0 : index
    %c0_1 = arith.constant 0 : index
    %0 = vector.load %arg0[%c0, %c0_0, %c0_1] : memref<2x4x16xf32, #tpu.memory_space<vmem>>, vector<2x4x16xf32>
    %c0_2 = arith.constant 0 : index
    %c0_3 = arith.constant 0 : index
    %1 = vector.load %arg1[%c0_2, %c0_3] : memref<4x32xf32, #tpu.memory_space<vmem>>, vector<4x32xf32>
    %c0_4 = arith.constant 0 : index
    %c0_5 = arith.constant 0 : index
    %2 = vector.load %arg2[%c0_4, %c0_5] : memref<1x32xf32, #tpu.memory_space<vmem>>, vector<1x32xf32>
    %cst = arith.constant 0.000000e+00 : f32
    %3 = vector.broadcast %cst : f32 to vector<2x32x32xf32>
    %c0_6 = arith.constant 0 : index
    %c0_7 = arith.constant 0 : index
    %c0_8 = arith.constant 0 : index
    %4 = vector.load %arg16[%c0_6, %c0_7, %c0_8] : memref<2x32x32xf32, #tpu.memory_space<vmem>>, vector<2x32x32xf32>
    tpu.vector_store %arg16[%c0_6, %c0_7, %c0_8], %3 {strides = array<i32>} : memref<2x32x32xf32, #tpu.memory_space<vmem>>, vector<2x32x32xf32>,
    %5 = vector.extract_strided_slice %0 {offsets = [0, 0, 0], sizes = [1, 4, 16], strides = [1, 1, 1]} : vector<2x4x16xf32> to vector<1x4x16xf32>
    %6 = vector.shape_cast %5 : vector<1x4x16xf32> to vector<4x16xf32>
    %cst_9 = arith.constant dense<0.000000e+00> : vector<16x32xf32>
    %7 = tpu.matmul %6, %1, %cst_9 {dimension_numbers = #tpu.dot_dimension_numbers<[0], [0], [1], [1], [0, 1, 1, 1], [], []>} : vector<4x16xf32>, vector<4x32xf32>, vector<16x32xf32> -> vector<16x32xf32>
    %8 = vector.broadcast %2 : vector<1x32xf32> to vector<16x32xf32>
    %9 = arith.addf %7, %8 : vector<16x32xf32>
    %c0_10 = arith.constant 0 : index
    %c8 = arith.constant 8 : index
    %c0_11 = arith.constant 0 : index
    %10 = vector.load %arg16[%c0_10, %c8, %c0_11] : memref<2x32x32xf32, #tpu.memory_space<vmem>>, vector<1x16x32xf32>
    %11 = vector.shape_cast %10 : vector<1x16x32xf32> to vector<16x32xf32>
    %12 = vector.shape_cast %9 : vector<16x32xf32> to vector<1x16x32xf32>
    tpu.vector_store %arg16[%c0_10, %c8, %c0_11], %12 {strides = array<i32>} : memref<2x32x32xf32, #tpu.memory_space<vmem>>, vector<1x16x32xf32>,
    %13 = vector.extract_strided_slice %0 {offsets = [1, 0, 0], sizes = [1, 4, 16], strides = [1, 1, 1]} : vector<2x4x16xf32> to vector<1x4x16xf32>
    %14 = vector.shape_cast %13 : vector<1x4x16xf32> to vector<4x16xf32>
    %cst_12 = arith.constant dense<0.000000e+00> : vector<16x32xf32>
    %15 = tpu.matmul %14, %1, %cst_12 {dimension_numbers = #tpu.dot_dimension_numbers<[0], [0], [1], [1], [0, 1, 1, 1], [], []>} : vector<4x16xf32>, vector<4x32xf32>, vector<16x32xf32> -> vector<16x32xf32>
    %16 = vector.broadcast %2 : vector<1x32xf32> to vector<16x32xf32>
    %17 = arith.addf %15, %16 : vector<16x32xf32>
    %c1 = arith.constant 1 : index
    %c8_13 = arith.constant 8 : index
    %c0_14 = arith.constant 0 : index
    %18 = vector.load %arg16[%c1, %c8_13, %c0_14] : memref<2x32x32xf32, #tpu.memory_space<vmem>>, vector<1x16x32xf32>
    %19 = vector.shape_cast %18 : vector<1x16x32xf32> to vector<16x32xf32>
    %20 = vector.shape_cast %17 : vector<16x32xf32> to vector<1x16x32xf32>
    tpu.vector_store %arg16[%c1, %c8_13, %c0_14], %20 {strides = array<i32>} : memref<2x32x32xf32, #tpu.memory_space<vmem>>, vector<1x16x32xf32>,
    %c0_15 = arith.constant 0 : index
    %c0_16 = arith.constant 0 : index
    %c0_17 = arith.constant 0 : index
    %21 = vector.load %arg3[%c0_15, %c0_16, %c0_17] : memref<3x32x32xf32, #tpu.memory_space<vmem>>, vector<3x32x32xf32>
    %c0_18 = arith.constant 0 : index
    %c0_19 = arith.constant 0 : index
    %22 = vector.load %arg4[%c0_18, %c0_19] : memref<1x32xf32, #tpu.memory_space<vmem>>, vector<1x32xf32>
    %cst_20 = arith.constant 0.000000e+00 : f32
    %23 = vector.broadcast %cst_20 : f32 to vector<2x32x32xf32>
    %c0_21 = arith.constant 0 : index
    %c0_22 = arith.constant 0 : index
    %c0_23 = arith.constant 0 : index
    %24 = vector.load %arg17[%c0_21, %c0_22, %c0_23] : memref<2x32x32xf32, #tpu.memory_space<vmem>>, vector<2x32x32xf32>
    tpu.vector_store %arg17[%c0_21, %c0_22, %c0_23], %23 {strides = array<i32>} : memref<2x32x32xf32, #tpu.memory_space<vmem>>, vector<2x32x32xf32>,
    %c0_24 = arith.constant 0 : index
    %c0_25 = arith.constant 0 : index
    %c0_26 = arith.constant 0 : index
    %25 = vector.load %arg16[%c0_24, %c0_25, %c0_26] : memref<2x32x32xf32, #tpu.memory_space<vmem>>, vector<1x32x32xf32>
    %26 = vector.shape_cast %25 : vector<1x32x32xf32> to vector<32x32xf32>
    %cst_27 = arith.constant 0.000000e+00 : f32
    %27 = vector.broadcast %cst_27 : f32 to vector<16x32xf32>
    %28 = vector.extract_strided_slice %26 {offsets = [7, 0], sizes = [16, 32], strides = [1, 1]} : vector<32x32xf32> to vector<16x32xf32>
    %29 = vector.extract_strided_slice %21 {offsets = [0, 0, 0], sizes = [1, 32, 32], strides = [1, 1, 1]} : vector<3x32x32xf32> to vector<1x32x32xf32>
    %30 = vector.shape_cast %29 : vector<1x32x32xf32> to vector<32x32xf32>
    %cst_28 = arith.constant dense<0.000000e+00> : vector<16x32xf32>
    %31 = tpu.matmul %28, %30, %cst_28 {dimension_numbers = #tpu.dot_dimension_numbers<[1], [0], [0], [1], [0, 0, 1, 1], [], []>} : vector<16x32xf32>, vector<32x32xf32>, vector<16x32xf32> -> vector<16x32xf32>
    %32 = arith.addf %27, %31 : vector<16x32xf32>
    %33 = vector.extract_strided_slice %26 {offsets = [8, 0], sizes = [16, 32], strides = [1, 1]} : vector<32x32xf32> to vector<16x32xf32>
    %34 = vector.extract_strided_slice %21 {offsets = [1, 0, 0], sizes = [1, 32, 32], strides = [1, 1, 1]} : vector<3x32x32xf32> to vector<1x32x32xf32>
    %35 = vector.shape_cast %34 : vector<1x32x32xf32> to vector<32x32xf32>
    %cst_29 = arith.constant dense<0.000000e+00> : vector<16x32xf32>
    %36 = tpu.matmul %33, %35, %cst_29 {dimension_numbers = #tpu.dot_dimension_numbers<[1], [0], [0], [1], [0, 0, 1, 1], [], []>} : vector<16x32xf32>, vector<32x32xf32>, vector<16x32xf32> -> vector<16x32xf32>
    %37 = arith.addf %32, %36 : vector<16x32xf32>
    %38 = vector.extract_strided_slice %26 {offsets = [9, 0], sizes = [16, 32], strides = [1, 1]} : vector<32x32xf32> to vector<16x32xf32>
    %39 = vector.extract_strided_slice %21 {offsets = [2, 0, 0], sizes = [1, 32, 32], strides = [1, 1, 1]} : vector<3x32x32xf32> to vector<1x32x32xf32>
    %40 = vector.shape_cast %39 : vector<1x32x32xf32> to vector<32x32xf32>
    %cst_30 = arith.constant dense<0.000000e+00> : vector<16x32xf32>
    %41 = tpu.matmul %38, %40, %cst_30 {dimension_numbers = #tpu.dot_dimension_numbers<[1], [0], [0], [1], [0, 0, 1, 1], [], []>} : vector<16x32xf32>, vector<32x32xf32>, vector<16x32xf32> -> vector<16x32xf32>
    %42 = arith.addf %37, %41 : vector<16x32xf32>
    %43 = vector.broadcast %22 : vector<1x32xf32> to vector<16x32xf32>
    %44 = arith.addf %42, %43 : vector<16x32xf32>
    %cst_31 = arith.constant 0.000000e+00 : f32
    %45 = vector.broadcast %cst_31 : f32 to vector<16x32xf32>
    %46 = arith.maximumf %44, %45 : vector<16x32xf32>
    %47 = vector.extract_strided_slice %46 {offsets = [0, 0], sizes = [2, 32], strides = [1, 1]} : vector<16x32xf32> to vector<2x32xf32>
    %cst_32 = arith.constant dense<0.000000e+00> : vector<32xf32>
    %48 = vector.multi_reduction <add>, %47, %cst_32 [0] : vector<2x32xf32> to vector<32xf32>
    %49 = vector.shape_cast %48 : vector<32xf32> to vector<1x32xf32>
    %cst_33 = arith.constant 2.000000e+00 : f32
    %50 = vector.broadcast %cst_33 : f32 to vector<1x32xf32>
    %51 = arith.divf %49, %50 : vector<1x32xf32>
    %c0_34 = arith.constant 0 : index
    %c8_35 = arith.constant 8 : index
    %c0_36 = arith.constant 0 : index
    %52 = vector.load %arg17[%c0_34, %c8_35, %c0_36] : memref<2x32x32xf32, #tpu.memory_space<vmem>>, vector<1x1x32xf32>
    %53 = vector.shape_cast %52 : vector<1x1x32xf32> to vector<1x32xf32>
    %54 = vector.shape_cast %51 : vector<1x32xf32> to vector<1x1x32xf32>
    tpu.vector_store %arg17[%c0_34, %c8_35, %c0_36], %54 {strides = array<i32>} : memref<2x32x32xf32, #tpu.memory_space<vmem>>, vector<1x1x32xf32>,
    %55 = vector.extract_strided_slice %46 {offsets = [2, 0], sizes = [2, 32], strides = [1, 1]} : vector<16x32xf32> to vector<2x32xf32>
    %cst_37 = arith.constant dense<0.000000e+00> : vector<32xf32>
    %56 = vector.multi_reduction <add>, %55, %cst_37 [0] : vector<2x32xf32> to vector<32xf32>
    %57 = vector.shape_cast %56 : vector<32xf32> to vector<1x32xf32>
    %cst_38 = arith.constant 2.000000e+00 : f32
    %58 = vector.broadcast %cst_38 : f32 to vector<1x32xf32>
    %59 = arith.divf %57, %58 : vector<1x32xf32>
    %c0_39 = arith.constant 0 : index
    %c9 = arith.constant 9 : index
    %c0_40 = arith.constant 0 : index
    %60 = vector.load %arg17[%c0_39, %c9, %c0_40] : memref<2x32x32xf32, #tpu.memory_space<vmem>>, vector<1x1x32xf32>
    %61 = vector.shape_cast %60 : vector<1x1x32xf32> to vector<1x32xf32>
    %62 = vector.shape_cast %59 : vector<1x32xf32> to vector<1x1x32xf32>
    tpu.vector_store %arg17[%c0_39, %c9, %c0_40], %62 {strides = array<i32>} : memref<2x32x32xf32, #tpu.memory_space<vmem>>, vector<1x1x32xf32>,
    %63 = vector.extract_strided_slice %46 {offsets = [4, 0], sizes = [2, 32], strides = [1, 1]} : vector<16x32xf32> to vector<2x32xf32>
    %cst_41 = arith.constant dense<0.000000e+00> : vector<32xf32>
    %64 = vector.multi_reduction <add>, %63, %cst_41 [0] : vector<2x32xf32> to vector<32xf32>
    %65 = vector.shape_cast %64 : vector<32xf32> to vector<1x32xf32>
    %cst_42 = arith.constant 2.000000e+00 : f32
    %66 = vector.broadcast %cst_42 : f32 to vector<1x32xf32>
    %67 = arith.divf %65, %66 : vector<1x32xf32>
    %c0_43 = arith.constant 0 : index
    %c10 = arith.constant 10 : index
    %c0_44 = arith.constant 0 : index
    %68 = vector.load %arg17[%c0_43, %c10, %c0_44] : memref<2x32x32xf32, #tpu.memory_space<vmem>>, vector<1x1x32xf32>
    %69 = vector.shape_cast %68 : vector<1x1x32xf32> to vector<1x32xf32>
    %70 = vector.shape_cast %67 : vector<1x32xf32> to vector<1x1x32xf32>
    tpu.vector_store %arg17[%c0_43, %c10, %c0_44], %70 {strides = array<i32>} : memref<2x32x32xf32, #tpu.memory_space<vmem>>, vector<1x1x32xf32>,
    %71 = vector.extract_strided_slice %46 {offsets = [6, 0], sizes = [2, 32], strides = [1, 1]} : vector<16x32xf32> to vector<2x32xf32>
    %cst_45 = arith.constant dense<0.000000e+00> : vector<32xf32>
    %72 = vector.multi_reduction <add>, %71, %cst_45 [0] : vector<2x32xf32> to vector<32xf32>
    %73 = vector.shape_cast %72 : vector<32xf32> to vector<1x32xf32>
    %cst_46 = arith.constant 2.000000e+00 : f32
    %74 = vector.broadcast %cst_46 : f32 to vector<1x32xf32>
    %75 = arith.divf %73, %74 : vector<1x32xf32>
    %c0_47 = arith.constant 0 : index
    %c11 = arith.constant 11 : index
    %c0_48 = arith.constant 0 : index
    %76 = vector.load %arg17[%c0_47, %c11, %c0_48] : memref<2x32x32xf32, #tpu.memory_space<vmem>>, vector<1x1x32xf32>
    %77 = vector.shape_cast %76 : vector<1x1x32xf32> to vector<1x32xf32>
    %78 = vector.shape_cast %75 : vector<1x32xf32> to vector<1x1x32xf32>
    tpu.vector_store %arg17[%c0_47, %c11, %c0_48], %78 {strides = array<i32>} : memref<2x32x32xf32, #tpu.memory_space<vmem>>, vector<1x1x32xf32>,
    %79 = vector.extract_strided_slice %46 {offsets = [8, 0], sizes = [2, 32], strides = [1, 1]} : vector<16x32xf32> to vector<2x32xf32>
    %cst_49 = arith.constant dense<0.000000e+00> : vector<32xf32>
    %80 = vector.multi_reduction <add>, %79, %cst_49 [0] : vector<2x32xf32> to vector<32xf32>
    %81 = vector.shape_cast %80 : vector<32xf32> to vector<1x32xf32>
    %cst_50 = arith.constant 2.000000e+00 : f32
    %82 = vector.broadcast %cst_50 : f32 to vector<1x32xf32>
    %83 = arith.divf %81, %82 : vector<1x32xf32>
    %c0_51 = arith.constant 0 : index
    %c12 = arith.constant 12 : index
    %c0_52 = arith.constant 0 : index
    %84 = vector.load %arg17[%c0_51, %c12, %c0_52] : memref<2x32x32xf32, #tpu.memory_space<vmem>>, vector<1x1x32xf32>
    %85 = vector.shape_cast %84 : vector<1x1x32xf32> to vector<1x32xf32>
    %86 = vector.shape_cast %83 : vector<1x32xf32> to vector<1x1x32xf32>
    tpu.vector_store %arg17[%c0_51, %c12, %c0_52], %86 {strides = array<i32>} : memref<2x32x32xf32, #tpu.memory_space<vmem>>, vector<1x1x32xf32>,
    %87 = vector.extract_strided_slice %46 {offsets = [10, 0], sizes = [2, 32], strides = [1, 1]} : vector<16x32xf32> to vector<2x32xf32>
    %cst_53 = arith.constant dense<0.000000e+00> : vector<32xf32>
    %88 = vector.multi_reduction <add>, %87, %cst_53 [0] : vector<2x32xf32> to vector<32xf32>
    %89 = vector.shape_cast %88 : vector<32xf32> to vector<1x32xf32>
    %cst_54 = arith.constant 2.000000e+00 : f32
    %90 = vector.broadcast %cst_54 : f32 to vector<1x32xf32>
    %91 = arith.divf %89, %90 : vector<1x32xf32>
    %c0_55 = arith.constant 0 : index
    %c13 = arith.constant 13 : index
    %c0_56 = arith.constant 0 : index
    %92 = vector.load %arg17[%c0_55, %c13, %c0_56] : memref<2x32x32xf32, #tpu.memory_space<vmem>>, vector<1x1x32xf32>
    %93 = vector.shape_cast %92 : vector<1x1x32xf32> to vector<1x32xf32>
    %94 = vector.shape_cast %91 : vector<1x32xf32> to vector<1x1x32xf32>
    tpu.vector_store %arg17[%c0_55, %c13, %c0_56], %94 {strides = array<i32>} : memref<2x32x32xf32, #tpu.memory_space<vmem>>, vector<1x1x32xf32>,
    %95 = vector.extract_strided_slice %46 {offsets = [12, 0], sizes = [2, 32], strides = [1, 1]} : vector<16x32xf32> to vector<2x32xf32>
    %cst_57 = arith.constant dense<0.000000e+00> : vector<32xf32>
    %96 = vector.multi_reduction <add>, %95, %cst_57 [0] : vector<2x32xf32> to vector<32xf32>
    %97 = vector.shape_cast %96 : vector<32xf32> to vector<1x32xf32>
    %cst_58 = arith.constant 2.000000e+00 : f32
    %98 = vector.broadcast %cst_58 : f32 to vector<1x32xf32>
    %99 = arith.divf %97, %98 : vector<1x32xf32>
    %c0_59 = arith.constant 0 : index
    %c14 = arith.constant 14 : index
    %c0_60 = arith.constant 0 : index
    %100 = vector.load %arg17[%c0_59, %c14, %c0_60] : memref<2x32x32xf32, #tpu.memory_space<vmem>>, vector<1x1x32xf32>
    %101 = vector.shape_cast %100 : vector<1x1x32xf32> to vector<1x32xf32>
    %102 = vector.shape_cast %99 : vector<1x32xf32> to vector<1x1x32xf32>
    tpu.vector_store %arg17[%c0_59, %c14, %c0_60], %102 {strides = array<i32>} : memref<2x32x32xf32, #tpu.memory_space<vmem>>, vector<1x1x32xf32>,
    %103 = vector.extract_strided_slice %46 {offsets = [14, 0], sizes = [2, 32], strides = [1, 1]} : vector<16x32xf32> to vector<2x32xf32>
    %cst_61 = arith.constant dense<0.000000e+00> : vector<32xf32>
    %104 = vector.multi_reduction <add>, %103, %cst_61 [0] : vector<2x32xf32> to vector<32xf32>
    %105 = vector.shape_cast %104 : vector<32xf32> to vector<1x32xf32>
    %cst_62 = arith.constant 2.000000e+00 : f32
    %106 = vector.broadcast %cst_62 : f32 to vector<1x32xf32>
    %107 = arith.divf %105, %106 : vector<1x32xf32>
    %c0_63 = arith.constant 0 : index
    %c15 = arith.constant 15 : index
    %c0_64 = arith.constant 0 : index
    %108 = vector.load %arg17[%c0_63, %c15, %c0_64] : memref<2x32x32xf32, #tpu.memory_space<vmem>>, vector<1x1x32xf32>
    %109 = vector.shape_cast %108 : vector<1x1x32xf32> to vector<1x32xf32>
    %110 = vector.shape_cast %107 : vector<1x32xf32> to vector<1x1x32xf32>
    tpu.vector_store %arg17[%c0_63, %c15, %c0_64], %110 {strides = array<i32>} : memref<2x32x32xf32, #tpu.memory_space<vmem>>, vector<1x1x32xf32>,
    %c1_65 = arith.constant 1 : index
    %c0_66 = arith.constant 0 : index
    %c0_67 = arith.constant 0 : index
    %111 = vector.load %arg16[%c1_65, %c0_66, %c0_67] : memref<2x32x32xf32, #tpu.memory_space<vmem>>, vector<1x32x32xf32>
    %112 = vector.shape_cast %111 : vector<1x32x32xf32> to vector<32x32xf32>
    %cst_68 = arith.constant 0.000000e+00 : f32
    %113 = vector.broadcast %cst_68 : f32 to vector<16x32xf32>
    %114 = vector.extract_strided_slice %112 {offsets = [7, 0], sizes = [16, 32], strides = [1, 1]} : vector<32x32xf32> to vector<16x32xf32>
    %115 = vector.extract_strided_slice %21 {offsets = [0, 0, 0], sizes = [1, 32, 32], strides = [1, 1, 1]} : vector<3x32x32xf32> to vector<1x32x32xf32>
    %116 = vector.shape_cast %115 : vector<1x32x32xf32> to vector<32x32xf32>
    %cst_69 = arith.constant dense<0.000000e+00> : vector<16x32xf32>
    %117 = tpu.matmul %114, %116, %cst_69 {dimension_numbers = #tpu.dot_dimension_numbers<[1], [0], [0], [1], [0, 0, 1, 1], [], []>} : vector<16x32xf32>, vector<32x32xf32>, vector<16x32xf32> -> vector<16x32xf32>
    %118 = arith.addf %113, %117 : vector<16x32xf32>
    %119 = vector.extract_strided_slice %112 {offsets = [8, 0], sizes = [16, 32], strides = [1, 1]} : vector<32x32xf32> to vector<16x32xf32>
    %120 = vector.extract_strided_slice %21 {offsets = [1, 0, 0], sizes = [1, 32, 32], strides = [1, 1, 1]} : vector<3x32x32xf32> to vector<1x32x32xf32>
    %121 = vector.shape_cast %120 : vector<1x32x32xf32> to vector<32x32xf32>
    %cst_70 = arith.constant dense<0.000000e+00> : vector<16x32xf32>
    %122 = tpu.matmul %119, %121, %cst_70 {dimension_numbers = #tpu.dot_dimension_numbers<[1], [0], [0], [1], [0, 0, 1, 1], [], []>} : vector<16x32xf32>, vector<32x32xf32>, vector<16x32xf32> -> vector<16x32xf32>
    %123 = arith.addf %118, %122 : vector<16x32xf32>
    %124 = vector.extract_strided_slice %112 {offsets = [9, 0], sizes = [16, 32], strides = [1, 1]} : vector<32x32xf32> to vector<16x32xf32>
    %125 = vector.extract_strided_slice %21 {offsets = [2, 0, 0], sizes = [1, 32, 32], strides = [1, 1, 1]} : vector<3x32x32xf32> to vector<1x32x32xf32>
    %126 = vector.shape_cast %125 : vector<1x32x32xf32> to vector<32x32xf32>
    %cst_71 = arith.constant dense<0.000000e+00> : vector<16x32xf32>
    %127 = tpu.matmul %124, %126, %cst_71 {dimension_numbers = #tpu.dot_dimension_numbers<[1], [0], [0], [1], [0, 0, 1, 1], [], []>} : vector<16x32xf32>, vector<32x32xf32>, vector<16x32xf32> -> vector<16x32xf32>
    %128 = arith.addf %123, %127 : vector<16x32xf32>
    %129 = vector.broadcast %22 : vector<1x32xf32> to vector<16x32xf32>
    %130 = arith.addf %128, %129 : vector<16x32xf32>
    %cst_72 = arith.constant 0.000000e+00 : f32
    %131 = vector.broadcast %cst_72 : f32 to vector<16x32xf32>
    %132 = arith.maximumf %130, %131 : vector<16x32xf32>
    %133 = vector.extract_strided_slice %132 {offsets = [0, 0], sizes = [2, 32], strides = [1, 1]} : vector<16x32xf32> to vector<2x32xf32>
    %cst_73 = arith.constant dense<0.000000e+00> : vector<32xf32>
    %134 = vector.multi_reduction <add>, %133, %cst_73 [0] : vector<2x32xf32> to vector<32xf32>
    %135 = vector.shape_cast %134 : vector<32xf32> to vector<1x32xf32>
    %cst_74 = arith.constant 2.000000e+00 : f32
    %136 = vector.broadcast %cst_74 : f32 to vector<1x32xf32>
    %137 = arith.divf %135, %136 : vector<1x32xf32>
    %c1_75 = arith.constant 1 : index
    %c8_76 = arith.constant 8 : index
    %c0_77 = arith.constant 0 : index
    %138 = vector.load %arg17[%c1_75, %c8_76, %c0_77] : memref<2x32x32xf32, #tpu.memory_space<vmem>>, vector<1x1x32xf32>
    %139 = vector.shape_cast %138 : vector<1x1x32xf32> to vector<1x32xf32>
    %140 = vector.shape_cast %137 : vector<1x32xf32> to vector<1x1x32xf32>
    tpu.vector_store %arg17[%c1_75, %c8_76, %c0_77], %140 {strides = array<i32>} : memref<2x32x32xf32, #tpu.memory_space<vmem>>, vector<1x1x32xf32>,
    %141 = vector.extract_strided_slice %132 {offsets = [2, 0], sizes = [2, 32], strides = [1, 1]} : vector<16x32xf32> to vector<2x32xf32>
    %cst_78 = arith.constant dense<0.000000e+00> : vector<32xf32>
    %142 = vector.multi_reduction <add>, %141, %cst_78 [0] : vector<2x32xf32> to vector<32xf32>
    %143 = vector.shape_cast %142 : vector<32xf32> to vector<1x32xf32>
    %cst_79 = arith.constant 2.000000e+00 : f32
    %144 = vector.broadcast %cst_79 : f32 to vector<1x32xf32>
    %145 = arith.divf %143, %144 : vector<1x32xf32>
    %c1_80 = arith.constant 1 : index
    %c9_81 = arith.constant 9 : index
    %c0_82 = arith.constant 0 : index
    %146 = vector.load %arg17[%c1_80, %c9_81, %c0_82] : memref<2x32x32xf32, #tpu.memory_space<vmem>>, vector<1x1x32xf32>
    %147 = vector.shape_cast %146 : vector<1x1x32xf32> to vector<1x32xf32>
    %148 = vector.shape_cast %145 : vector<1x32xf32> to vector<1x1x32xf32>
    tpu.vector_store %arg17[%c1_80, %c9_81, %c0_82], %148 {strides = array<i32>} : memref<2x32x32xf32, #tpu.memory_space<vmem>>, vector<1x1x32xf32>,
    %149 = vector.extract_strided_slice %132 {offsets = [4, 0], sizes = [2, 32], strides = [1, 1]} : vector<16x32xf32> to vector<2x32xf32>
    %cst_83 = arith.constant dense<0.000000e+00> : vector<32xf32>
    %150 = vector.multi_reduction <add>, %149, %cst_83 [0] : vector<2x32xf32> to vector<32xf32>
    %151 = vector.shape_cast %150 : vector<32xf32> to vector<1x32xf32>
    %cst_84 = arith.constant 2.000000e+00 : f32
    %152 = vector.broadcast %cst_84 : f32 to vector<1x32xf32>
    %153 = arith.divf %151, %152 : vector<1x32xf32>
    %c1_85 = arith.constant 1 : index
    %c10_86 = arith.constant 10 : index
    %c0_87 = arith.constant 0 : index
    %154 = vector.load %arg17[%c1_85, %c10_86, %c0_87] : memref<2x32x32xf32, #tpu.memory_space<vmem>>, vector<1x1x32xf32>
    %155 = vector.shape_cast %154 : vector<1x1x32xf32> to vector<1x32xf32>
    %156 = vector.shape_cast %153 : vector<1x32xf32> to vector<1x1x32xf32>
    tpu.vector_store %arg17[%c1_85, %c10_86, %c0_87], %156 {strides = array<i32>} : memref<2x32x32xf32, #tpu.memory_space<vmem>>, vector<1x1x32xf32>,
    %157 = vector.extract_strided_slice %132 {offsets = [6, 0], sizes = [2, 32], strides = [1, 1]} : vector<16x32xf32> to vector<2x32xf32>
    %cst_88 = arith.constant dense<0.000000e+00> : vector<32xf32>
    %158 = vector.multi_reduction <add>, %157, %cst_88 [0] : vector<2x32xf32> to vector<32xf32>
    %159 = vector.shape_cast %158 : vector<32xf32> to vector<1x32xf32>
    %cst_89 = arith.constant 2.000000e+00 : f32
    %160 = vector.broadcast %cst_89 : f32 to vector<1x32xf32>
    %161 = arith.divf %159, %160 : vector<1x32xf32>
    %c1_90 = arith.constant 1 : index
    %c11_91 = arith.constant 11 : index
    %c0_92 = arith.constant 0 : index
    %162 = vector.load %arg17[%c1_90, %c11_91, %c0_92] : memref<2x32x32xf32, #tpu.memory_space<vmem>>, vector<1x1x32xf32>
    %163 = vector.shape_cast %162 : vector<1x1x32xf32> to vector<1x32xf32>
    %164 = vector.shape_cast %161 : vector<1x32xf32> to vector<1x1x32xf32>
    tpu.vector_store %arg17[%c1_90, %c11_91, %c0_92], %164 {strides = array<i32>} : memref<2x32x32xf32, #tpu.memory_space<vmem>>, vector<1x1x32xf32>,
    %165 = vector.extract_strided_slice %132 {offsets = [8, 0], sizes = [2, 32], strides = [1, 1]} : vector<16x32xf32> to vector<2x32xf32>
    %cst_93 = arith.constant dense<0.000000e+00> : vector<32xf32>
    %166 = vector.multi_reduction <add>, %165, %cst_93 [0] : vector<2x32xf32> to vector<32xf32>
    %167 = vector.shape_cast %166 : vector<32xf32> to vector<1x32xf32>
    %cst_94 = arith.constant 2.000000e+00 : f32
    %168 = vector.broadcast %cst_94 : f32 to vector<1x32xf32>
    %169 = arith.divf %167, %168 : vector<1x32xf32>
    %c1_95 = arith.constant 1 : index
    %c12_96 = arith.constant 12 : index
    %c0_97 = arith.constant 0 : index
    %170 = vector.load %arg17[%c1_95, %c12_96, %c0_97] : memref<2x32x32xf32, #tpu.memory_space<vmem>>, vector<1x1x32xf32>
    %171 = vector.shape_cast %170 : vector<1x1x32xf32> to vector<1x32xf32>
    %172 = vector.shape_cast %169 : vector<1x32xf32> to vector<1x1x32xf32>
    tpu.vector_store %arg17[%c1_95, %c12_96, %c0_97], %172 {strides = array<i32>} : memref<2x32x32xf32, #tpu.memory_space<vmem>>, vector<1x1x32xf32>,
    %173 = vector.extract_strided_slice %132 {offsets = [10, 0], sizes = [2, 32], strides = [1, 1]} : vector<16x32xf32> to vector<2x32xf32>
    %cst_98 = arith.constant dense<0.000000e+00> : vector<32xf32>
    %174 = vector.multi_reduction <add>, %173, %cst_98 [0] : vector<2x32xf32> to vector<32xf32>
    %175 = vector.shape_cast %174 : vector<32xf32> to vector<1x32xf32>
    %cst_99 = arith.constant 2.000000e+00 : f32
    %176 = vector.broadcast %cst_99 : f32 to vector<1x32xf32>
    %177 = arith.divf %175, %176 : vector<1x32xf32>
    %c1_100 = arith.constant 1 : index
    %c13_101 = arith.constant 13 : index
    %c0_102 = arith.constant 0 : index
    %178 = vector.load %arg17[%c1_100, %c13_101, %c0_102] : memref<2x32x32xf32, #tpu.memory_space<vmem>>, vector<1x1x32xf32>
    %179 = vector.shape_cast %178 : vector<1x1x32xf32> to vector<1x32xf32>
    %180 = vector.shape_cast %177 : vector<1x32xf32> to vector<1x1x32xf32>
    tpu.vector_store %arg17[%c1_100, %c13_101, %c0_102], %180 {strides = array<i32>} : memref<2x32x32xf32, #tpu.memory_space<vmem>>, vector<1x1x32xf32>,
    %181 = vector.extract_strided_slice %132 {offsets = [12, 0], sizes = [2, 32], strides = [1, 1]} : vector<16x32xf32> to vector<2x32xf32>
    %cst_103 = arith.constant dense<0.000000e+00> : vector<32xf32>
    %182 = vector.multi_reduction <add>, %181, %cst_103 [0] : vector<2x32xf32> to vector<32xf32>
    %183 = vector.shape_cast %182 : vector<32xf32> to vector<1x32xf32>
    %cst_104 = arith.constant 2.000000e+00 : f32
    %184 = vector.broadcast %cst_104 : f32 to vector<1x32xf32>
    %185 = arith.divf %183, %184 : vector<1x32xf32>
    %c1_105 = arith.constant 1 : index
    %c14_106 = arith.constant 14 : index
    %c0_107 = arith.constant 0 : index
    %186 = vector.load %arg17[%c1_105, %c14_106, %c0_107] : memref<2x32x32xf32, #tpu.memory_space<vmem>>, vector<1x1x32xf32>
    %187 = vector.shape_cast %186 : vector<1x1x32xf32> to vector<1x32xf32>
    %188 = vector.shape_cast %185 : vector<1x32xf32> to vector<1x1x32xf32>
    tpu.vector_store %arg17[%c1_105, %c14_106, %c0_107], %188 {strides = array<i32>} : memref<2x32x32xf32, #tpu.memory_space<vmem>>, vector<1x1x32xf32>,
    %189 = vector.extract_strided_slice %132 {offsets = [14, 0], sizes = [2, 32], strides = [1, 1]} : vector<16x32xf32> to vector<2x32xf32>
    %cst_108 = arith.constant dense<0.000000e+00> : vector<32xf32>
    %190 = vector.multi_reduction <add>, %189, %cst_108 [0] : vector<2x32xf32> to vector<32xf32>
    %191 = vector.shape_cast %190 : vector<32xf32> to vector<1x32xf32>
    %cst_109 = arith.constant 2.000000e+00 : f32
    %192 = vector.broadcast %cst_109 : f32 to vector<1x32xf32>
    %193 = arith.divf %191, %192 : vector<1x32xf32>
    %c1_110 = arith.constant 1 : index
    %c15_111 = arith.constant 15 : index
    %c0_112 = arith.constant 0 : index
    %194 = vector.load %arg17[%c1_110, %c15_111, %c0_112] : memref<2x32x32xf32, #tpu.memory_space<vmem>>, vector<1x1x32xf32>
    %195 = vector.shape_cast %194 : vector<1x1x32xf32> to vector<1x32xf32>
    %196 = vector.shape_cast %193 : vector<1x32xf32> to vector<1x1x32xf32>
    tpu.vector_store %arg17[%c1_110, %c15_111, %c0_112], %196 {strides = array<i32>} : memref<2x32x32xf32, #tpu.memory_space<vmem>>, vector<1x1x32xf32>,
    %c0_113 = arith.constant 0 : index
    %c0_114 = arith.constant 0 : index
    %c0_115 = arith.constant 0 : index
    %197 = vector.load %arg5[%c0_113, %c0_114, %c0_115] : memref<3x32x32xf32, #tpu.memory_space<vmem>>, vector<3x32x32xf32>
    %c0_116 = arith.constant 0 : index
    %c0_117 = arith.constant 0 : index
    %198 = vector.load %arg6[%c0_116, %c0_117] : memref<1x32xf32, #tpu.memory_space<vmem>>, vector<1x32xf32>
    %cst_118 = arith.constant 0.000000e+00 : f32
    %199 = vector.broadcast %cst_118 : f32 to vector<2x32x32xf32>
    %c0_119 = arith.constant 0 : index
    %c0_120 = arith.constant 0 : index
    %c0_121 = arith.constant 0 : index
    %200 = vector.load %arg16[%c0_119, %c0_120, %c0_121] : memref<2x32x32xf32, #tpu.memory_space<vmem>>, vector<2x32x32xf32>
    tpu.vector_store %arg16[%c0_119, %c0_120, %c0_121], %199 {strides = array<i32>} : memref<2x32x32xf32, #tpu.memory_space<vmem>>, vector<2x32x32xf32>,
    %c0_122 = arith.constant 0 : index
    %c0_123 = arith.constant 0 : index
    %c0_124 = arith.constant 0 : index
    %201 = vector.load %arg17[%c0_122, %c0_123, %c0_124] : memref<2x32x32xf32, #tpu.memory_space<vmem>>, vector<1x32x32xf32>
    %202 = vector.shape_cast %201 : vector<1x32x32xf32> to vector<32x32xf32>
    %cst_125 = arith.constant 0.000000e+00 : f32
    %203 = vector.broadcast %cst_125 : f32 to vector<8x32xf32>
    %204 = vector.extract_strided_slice %202 {offsets = [7, 0], sizes = [8, 32], strides = [1, 1]} : vector<32x32xf32> to vector<8x32xf32>
    %205 = vector.extract_strided_slice %197 {offsets = [0, 0, 0], sizes = [1, 32, 32], strides = [1, 1, 1]} : vector<3x32x32xf32> to vector<1x32x32xf32>
    %206 = vector.shape_cast %205 : vector<1x32x32xf32> to vector<32x32xf32>
    %cst_126 = arith.constant dense<0.000000e+00> : vector<8x32xf32>
    %207 = tpu.matmul %204, %206, %cst_126 {dimension_numbers = #tpu.dot_dimension_numbers<[1], [0], [0], [1], [0, 0, 1, 1], [], []>} : vector<8x32xf32>, vector<32x32xf32>, vector<8x32xf32> -> vector<8x32xf32>
    %208 = arith.addf %203, %207 : vector<8x32xf32>
    %209 = vector.extract_strided_slice %202 {offsets = [8, 0], sizes = [8, 32], strides = [1, 1]} : vector<32x32xf32> to vector<8x32xf32>
    %210 = vector.extract_strided_slice %197 {offsets = [1, 0, 0], sizes = [1, 32, 32], strides = [1, 1, 1]} : vector<3x32x32xf32> to vector<1x32x32xf32>
    %211 = vector.shape_cast %210 : vector<1x32x32xf32> to vector<32x32xf32>
    %cst_127 = arith.constant dense<0.000000e+00> : vector<8x32xf32>
    %212 = tpu.matmul %209, %211, %cst_127 {dimension_numbers = #tpu.dot_dimension_numbers<[1], [0], [0], [1], [0, 0, 1, 1], [], []>} : vector<8x32xf32>, vector<32x32xf32>, vector<8x32xf32> -> vector<8x32xf32>
    %213 = arith.addf %208, %212 : vector<8x32xf32>
    %214 = vector.extract_strided_slice %202 {offsets = [9, 0], sizes = [8, 32], strides = [1, 1]} : vector<32x32xf32> to vector<8x32xf32>
    %215 = vector.extract_strided_slice %197 {offsets = [2, 0, 0], sizes = [1, 32, 32], strides = [1, 1, 1]} : vector<3x32x32xf32> to vector<1x32x32xf32>
    %216 = vector.shape_cast %215 : vector<1x32x32xf32> to vector<32x32xf32>
    %cst_128 = arith.constant dense<0.000000e+00> : vector<8x32xf32>
    %217 = tpu.matmul %214, %216, %cst_128 {dimension_numbers = #tpu.dot_dimension_numbers<[1], [0], [0], [1], [0, 0, 1, 1], [], []>} : vector<8x32xf32>, vector<32x32xf32>, vector<8x32xf32> -> vector<8x32xf32>
    %218 = arith.addf %213, %217 : vector<8x32xf32>
    %219 = vector.broadcast %198 : vector<1x32xf32> to vector<8x32xf32>
    %220 = arith.addf %218, %219 : vector<8x32xf32>
    %cst_129 = arith.constant 0.000000e+00 : f32
    %221 = vector.broadcast %cst_129 : f32 to vector<8x32xf32>
    %222 = arith.maximumf %220, %221 : vector<8x32xf32>
    %223 = vector.extract_strided_slice %222 {offsets = [0, 0], sizes = [2, 32], strides = [1, 1]} : vector<8x32xf32> to vector<2x32xf32>
    %cst_130 = arith.constant dense<0.000000e+00> : vector<32xf32>
    %224 = vector.multi_reduction <add>, %223, %cst_130 [0] : vector<2x32xf32> to vector<32xf32>
    %225 = vector.shape_cast %224 : vector<32xf32> to vector<1x32xf32>
    %cst_131 = arith.constant 2.000000e+00 : f32
    %226 = vector.broadcast %cst_131 : f32 to vector<1x32xf32>
    %227 = arith.divf %225, %226 : vector<1x32xf32>
    %c0_132 = arith.constant 0 : index
    %c8_133 = arith.constant 8 : index
    %c0_134 = arith.constant 0 : index
    %228 = vector.load %arg16[%c0_132, %c8_133, %c0_134] : memref<2x32x32xf32, #tpu.memory_space<vmem>>, vector<1x1x32xf32>
    %229 = vector.shape_cast %228 : vector<1x1x32xf32> to vector<1x32xf32>
    %230 = vector.shape_cast %227 : vector<1x32xf32> to vector<1x1x32xf32>
    tpu.vector_store %arg16[%c0_132, %c8_133, %c0_134], %230 {strides = array<i32>} : memref<2x32x32xf32, #tpu.memory_space<vmem>>, vector<1x1x32xf32>,
    %231 = vector.extract_strided_slice %222 {offsets = [2, 0], sizes = [2, 32], strides = [1, 1]} : vector<8x32xf32> to vector<2x32xf32>
    %cst_135 = arith.constant dense<0.000000e+00> : vector<32xf32>
    %232 = vector.multi_reduction <add>, %231, %cst_135 [0] : vector<2x32xf32> to vector<32xf32>
    %233 = vector.shape_cast %232 : vector<32xf32> to vector<1x32xf32>
    %cst_136 = arith.constant 2.000000e+00 : f32
    %234 = vector.broadcast %cst_136 : f32 to vector<1x32xf32>
    %235 = arith.divf %233, %234 : vector<1x32xf32>
    %c0_137 = arith.constant 0 : index
    %c9_138 = arith.constant 9 : index
    %c0_139 = arith.constant 0 : index
    %236 = vector.load %arg16[%c0_137, %c9_138, %c0_139] : memref<2x32x32xf32, #tpu.memory_space<vmem>>, vector<1x1x32xf32>
    %237 = vector.shape_cast %236 : vector<1x1x32xf32> to vector<1x32xf32>
    %238 = vector.shape_cast %235 : vector<1x32xf32> to vector<1x1x32xf32>
    tpu.vector_store %arg16[%c0_137, %c9_138, %c0_139], %238 {strides = array<i32>} : memref<2x32x32xf32, #tpu.memory_space<vmem>>, vector<1x1x32xf32>,
    %239 = vector.extract_strided_slice %222 {offsets = [4, 0], sizes = [2, 32], strides = [1, 1]} : vector<8x32xf32> to vector<2x32xf32>
    %cst_140 = arith.constant dense<0.000000e+00> : vector<32xf32>
    %240 = vector.multi_reduction <add>, %239, %cst_140 [0] : vector<2x32xf32> to vector<32xf32>
    %241 = vector.shape_cast %240 : vector<32xf32> to vector<1x32xf32>
    %cst_141 = arith.constant 2.000000e+00 : f32
    %242 = vector.broadcast %cst_141 : f32 to vector<1x32xf32>
    %243 = arith.divf %241, %242 : vector<1x32xf32>
    %c0_142 = arith.constant 0 : index
    %c10_143 = arith.constant 10 : index
    %c0_144 = arith.constant 0 : index
    %244 = vector.load %arg16[%c0_142, %c10_143, %c0_144] : memref<2x32x32xf32, #tpu.memory_space<vmem>>, vector<1x1x32xf32>
    %245 = vector.shape_cast %244 : vector<1x1x32xf32> to vector<1x32xf32>
    %246 = vector.shape_cast %243 : vector<1x32xf32> to vector<1x1x32xf32>
    tpu.vector_store %arg16[%c0_142, %c10_143, %c0_144], %246 {strides = array<i32>} : memref<2x32x32xf32, #tpu.memory_space<vmem>>, vector<1x1x32xf32>,
    %247 = vector.extract_strided_slice %222 {offsets = [6, 0], sizes = [2, 32], strides = [1, 1]} : vector<8x32xf32> to vector<2x32xf32>
    %cst_145 = arith.constant dense<0.000000e+00> : vector<32xf32>
    %248 = vector.multi_reduction <add>, %247, %cst_145 [0] : vector<2x32xf32> to vector<32xf32>
    %249 = vector.shape_cast %248 : vector<32xf32> to vector<1x32xf32>
    %cst_146 = arith.constant 2.000000e+00 : f32
    %250 = vector.broadcast %cst_146 : f32 to vector<1x32xf32>
    %251 = arith.divf %249, %250 : vector<1x32xf32>
    %c0_147 = arith.constant 0 : index
    %c11_148 = arith.constant 11 : index
    %c0_149 = arith.constant 0 : index
    %252 = vector.load %arg16[%c0_147, %c11_148, %c0_149] : memref<2x32x32xf32, #tpu.memory_space<vmem>>, vector<1x1x32xf32>
    %253 = vector.shape_cast %252 : vector<1x1x32xf32> to vector<1x32xf32>
    %254 = vector.shape_cast %251 : vector<1x32xf32> to vector<1x1x32xf32>
    tpu.vector_store %arg16[%c0_147, %c11_148, %c0_149], %254 {strides = array<i32>} : memref<2x32x32xf32, #tpu.memory_space<vmem>>, vector<1x1x32xf32>,
    %c1_150 = arith.constant 1 : index
    %c0_151 = arith.constant 0 : index
    %c0_152 = arith.constant 0 : index
    %255 = vector.load %arg17[%c1_150, %c0_151, %c0_152] : memref<2x32x32xf32, #tpu.memory_space<vmem>>, vector<1x32x32xf32>
    %256 = vector.shape_cast %255 : vector<1x32x32xf32> to vector<32x32xf32>
    %cst_153 = arith.constant 0.000000e+00 : f32
    %257 = vector.broadcast %cst_153 : f32 to vector<8x32xf32>
    %258 = vector.extract_strided_slice %256 {offsets = [7, 0], sizes = [8, 32], strides = [1, 1]} : vector<32x32xf32> to vector<8x32xf32>
    %259 = vector.extract_strided_slice %197 {offsets = [0, 0, 0], sizes = [1, 32, 32], strides = [1, 1, 1]} : vector<3x32x32xf32> to vector<1x32x32xf32>
    %260 = vector.shape_cast %259 : vector<1x32x32xf32> to vector<32x32xf32>
    %cst_154 = arith.constant dense<0.000000e+00> : vector<8x32xf32>
    %261 = tpu.matmul %258, %260, %cst_154 {dimension_numbers = #tpu.dot_dimension_numbers<[1], [0], [0], [1], [0, 0, 1, 1], [], []>} : vector<8x32xf32>, vector<32x32xf32>, vector<8x32xf32> -> vector<8x32xf32>
    %262 = arith.addf %257, %261 : vector<8x32xf32>
    %263 = vector.extract_strided_slice %256 {offsets = [8, 0], sizes = [8, 32], strides = [1, 1]} : vector<32x32xf32> to vector<8x32xf32>
    %264 = vector.extract_strided_slice %197 {offsets = [1, 0, 0], sizes = [1, 32, 32], strides = [1, 1, 1]} : vector<3x32x32xf32> to vector<1x32x32xf32>
    %265 = vector.shape_cast %264 : vector<1x32x32xf32> to vector<32x32xf32>
    %cst_155 = arith.constant dense<0.000000e+00> : vector<8x32xf32>
    %266 = tpu.matmul %263, %265, %cst_155 {dimension_numbers = #tpu.dot_dimension_numbers<[1], [0], [0], [1], [0, 0, 1, 1], [], []>} : vector<8x32xf32>, vector<32x32xf32>, vector<8x32xf32> -> vector<8x32xf32>
    %267 = arith.addf %262, %266 : vector<8x32xf32>
    %268 = vector.extract_strided_slice %256 {offsets = [9, 0], sizes = [8, 32], strides = [1, 1]} : vector<32x32xf32> to vector<8x32xf32>
    %269 = vector.extract_strided_slice %197 {offsets = [2, 0, 0], sizes = [1, 32, 32], strides = [1, 1, 1]} : vector<3x32x32xf32> to vector<1x32x32xf32>
    %270 = vector.shape_cast %269 : vector<1x32x32xf32> to vector<32x32xf32>
    %cst_156 = arith.constant dense<0.000000e+00> : vector<8x32xf32>
    %271 = tpu.matmul %268, %270, %cst_156 {dimension_numbers = #tpu.dot_dimension_numbers<[1], [0], [0], [1], [0, 0, 1, 1], [], []>} : vector<8x32xf32>, vector<32x32xf32>, vector<8x32xf32> -> vector<8x32xf32>
    %272 = arith.addf %267, %271 : vector<8x32xf32>
    %273 = vector.broadcast %198 : vector<1x32xf32> to vector<8x32xf32>
    %274 = arith.addf %272, %273 : vector<8x32xf32>
    %cst_157 = arith.constant 0.000000e+00 : f32
    %275 = vector.broadcast %cst_157 : f32 to vector<8x32xf32>
    %276 = arith.maximumf %274, %275 : vector<8x32xf32>
    %277 = vector.extract_strided_slice %276 {offsets = [0, 0], sizes = [2, 32], strides = [1, 1]} : vector<8x32xf32> to vector<2x32xf32>
    %cst_158 = arith.constant dense<0.000000e+00> : vector<32xf32>
    %278 = vector.multi_reduction <add>, %277, %cst_158 [0] : vector<2x32xf32> to vector<32xf32>
    %279 = vector.shape_cast %278 : vector<32xf32> to vector<1x32xf32>
    %cst_159 = arith.constant 2.000000e+00 : f32
    %280 = vector.broadcast %cst_159 : f32 to vector<1x32xf32>
    %281 = arith.divf %279, %280 : vector<1x32xf32>
    %c1_160 = arith.constant 1 : index
    %c8_161 = arith.constant 8 : index
    %c0_162 = arith.constant 0 : index
    %282 = vector.load %arg16[%c1_160, %c8_161, %c0_162] : memref<2x32x32xf32, #tpu.memory_space<vmem>>, vector<1x1x32xf32>
    %283 = vector.shape_cast %282 : vector<1x1x32xf32> to vector<1x32xf32>
    %284 = vector.shape_cast %281 : vector<1x32xf32> to vector<1x1x32xf32>
    tpu.vector_store %arg16[%c1_160, %c8_161, %c0_162], %284 {strides = array<i32>} : memref<2x32x32xf32, #tpu.memory_space<vmem>>, vector<1x1x32xf32>,
    %285 = vector.extract_strided_slice %276 {offsets = [2, 0], sizes = [2, 32], strides = [1, 1]} : vector<8x32xf32> to vector<2x32xf32>
    %cst_163 = arith.constant dense<0.000000e+00> : vector<32xf32>
    %286 = vector.multi_reduction <add>, %285, %cst_163 [0] : vector<2x32xf32> to vector<32xf32>
    %287 = vector.shape_cast %286 : vector<32xf32> to vector<1x32xf32>
    %cst_164 = arith.constant 2.000000e+00 : f32
    %288 = vector.broadcast %cst_164 : f32 to vector<1x32xf32>
    %289 = arith.divf %287, %288 : vector<1x32xf32>
    %c1_165 = arith.constant 1 : index
    %c9_166 = arith.constant 9 : index
    %c0_167 = arith.constant 0 : index
    %290 = vector.load %arg16[%c1_165, %c9_166, %c0_167] : memref<2x32x32xf32, #tpu.memory_space<vmem>>, vector<1x1x32xf32>
    %291 = vector.shape_cast %290 : vector<1x1x32xf32> to vector<1x32xf32>
    %292 = vector.shape_cast %289 : vector<1x32xf32> to vector<1x1x32xf32>
    tpu.vector_store %arg16[%c1_165, %c9_166, %c0_167], %292 {strides = array<i32>} : memref<2x32x32xf32, #tpu.memory_space<vmem>>, vector<1x1x32xf32>,
    %293 = vector.extract_strided_slice %276 {offsets = [4, 0], sizes = [2, 32], strides = [1, 1]} : vector<8x32xf32> to vector<2x32xf32>
    %cst_168 = arith.constant dense<0.000000e+00> : vector<32xf32>
    %294 = vector.multi_reduction <add>, %293, %cst_168 [0] : vector<2x32xf32> to vector<32xf32>
    %295 = vector.shape_cast %294 : vector<32xf32> to vector<1x32xf32>
    %cst_169 = arith.constant 2.000000e+00 : f32
    %296 = vector.broadcast %cst_169 : f32 to vector<1x32xf32>
    %297 = arith.divf %295, %296 : vector<1x32xf32>
    %c1_170 = arith.constant 1 : index
    %c10_171 = arith.constant 10 : index
    %c0_172 = arith.constant 0 : index
    %298 = vector.load %arg16[%c1_170, %c10_171, %c0_172] : memref<2x32x32xf32, #tpu.memory_space<vmem>>, vector<1x1x32xf32>
    %299 = vector.shape_cast %298 : vector<1x1x32xf32> to vector<1x32xf32>
    %300 = vector.shape_cast %297 : vector<1x32xf32> to vector<1x1x32xf32>
    tpu.vector_store %arg16[%c1_170, %c10_171, %c0_172], %300 {strides = array<i32>} : memref<2x32x32xf32, #tpu.memory_space<vmem>>, vector<1x1x32xf32>,
    %301 = vector.extract_strided_slice %276 {offsets = [6, 0], sizes = [2, 32], strides = [1, 1]} : vector<8x32xf32> to vector<2x32xf32>
    %cst_173 = arith.constant dense<0.000000e+00> : vector<32xf32>
    %302 = vector.multi_reduction <add>, %301, %cst_173 [0] : vector<2x32xf32> to vector<32xf32>
    %303 = vector.shape_cast %302 : vector<32xf32> to vector<1x32xf32>
    %cst_174 = arith.constant 2.000000e+00 : f32
    %304 = vector.broadcast %cst_174 : f32 to vector<1x32xf32>
    %305 = arith.divf %303, %304 : vector<1x32xf32>
    %c1_175 = arith.constant 1 : index
    %c11_176 = arith.constant 11 : index
    %c0_177 = arith.constant 0 : index
    %306 = vector.load %arg16[%c1_175, %c11_176, %c0_177] : memref<2x32x32xf32, #tpu.memory_space<vmem>>, vector<1x1x32xf32>
    %307 = vector.shape_cast %306 : vector<1x1x32xf32> to vector<1x32xf32>
    %308 = vector.shape_cast %305 : vector<1x32xf32> to vector<1x1x32xf32>
    tpu.vector_store %arg16[%c1_175, %c11_176, %c0_177], %308 {strides = array<i32>} : memref<2x32x32xf32, #tpu.memory_space<vmem>>, vector<1x1x32xf32>,
    %309 = tpu.iota {dimensions = array<i32: 0>} : vector<2x32xi32>
    %cst_178 = arith.constant 0.000000e+00 : f32
    %310 = vector.broadcast %cst_178 : f32 to vector<2x32xf32>
    %c0_179 = arith.constant 0 : index
    %c0_180 = arith.constant 0 : index
    %c0_181 = arith.constant 0 : index
    %311 = vector.load %arg16[%c0_179, %c0_180, %c0_181] : memref<2x32x32xf32, #tpu.memory_space<vmem>>, vector<1x32x32xf32>
    %312 = vector.shape_cast %311 : vector<1x32x32xf32> to vector<32x32xf32>
    %313 = vector.extract_strided_slice %312 {offsets = [8, 0], sizes = [4, 32], strides = [1, 1]} : vector<32x32xf32> to vector<4x32xf32>
    %cst_182 = arith.constant 0.000000e+00 : f32
    %314 = vector.broadcast %cst_182 : f32 to vector<4x32xf32>
    %315 = arith.maximumf %313, %314 : vector<4x32xf32>
    %cst_183 = arith.constant dense<0.000000e+00> : vector<32xf32>
    %316 = vector.multi_reduction <add>, %315, %cst_183 [0] : vector<4x32xf32> to vector<32xf32>
    %317 = vector.shape_cast %316 : vector<32xf32> to vector<1x32xf32>
    %cst_184 = arith.constant 4.000000e+00 : f32
    %318 = vector.broadcast %cst_184 : f32 to vector<1x32xf32>
    %319 = arith.divf %317, %318 : vector<1x32xf32>
    %c0_i32 = arith.constant 0 : i32
    %320 = vector.broadcast %c0_i32 : i32 to vector<2x32xi32>
    %321 = arith.cmpi eq, %309, %320 : vector<2x32xi32>
    %cst_185 = arith.constant 0.000000e+00 : f32
    %322 = vector.shape_cast %319 : vector<1x32xf32> to vector<1x32xf32>
    %323 = vector.broadcast %322 : vector<1x32xf32> to vector<2x32xf32>
    %324 = vector.broadcast %cst_185 : f32 to vector<2x32xf32>
    %325 = arith.select %321, %323, %324 : vector<2x32xi1>, vector<2x32xf32>
    %326 = arith.addf %310, %325 : vector<2x32xf32>
    %c1_186 = arith.constant 1 : index
    %c0_187 = arith.constant 0 : index
    %c0_188 = arith.constant 0 : index
    %327 = vector.load %arg16[%c1_186, %c0_187, %c0_188] : memref<2x32x32xf32, #tpu.memory_space<vmem>>, vector<1x32x32xf32>
    %328 = vector.shape_cast %327 : vector<1x32x32xf32> to vector<32x32xf32>
    %329 = vector.extract_strided_slice %328 {offsets = [8, 0], sizes = [4, 32], strides = [1, 1]} : vector<32x32xf32> to vector<4x32xf32>
    %cst_189 = arith.constant 0.000000e+00 : f32
    %330 = vector.broadcast %cst_189 : f32 to vector<4x32xf32>
    %331 = arith.maximumf %329, %330 : vector<4x32xf32>
    %cst_190 = arith.constant dense<0.000000e+00> : vector<32xf32>
    %332 = vector.multi_reduction <add>, %331, %cst_190 [0] : vector<4x32xf32> to vector<32xf32>
    %333 = vector.shape_cast %332 : vector<32xf32> to vector<1x32xf32>
    %cst_191 = arith.constant 4.000000e+00 : f32
    %334 = vector.broadcast %cst_191 : f32 to vector<1x32xf32>
    %335 = arith.divf %333, %334 : vector<1x32xf32>
    %c1_i32 = arith.constant 1 : i32
    %336 = vector.broadcast %c1_i32 : i32 to vector<2x32xi32>
    %337 = arith.cmpi eq, %309, %336 : vector<2x32xi32>
    %cst_192 = arith.constant 0.000000e+00 : f32
    %338 = vector.shape_cast %335 : vector<1x32xf32> to vector<1x32xf32>
    %339 = vector.broadcast %338 : vector<1x32xf32> to vector<2x32xf32>
    %340 = vector.broadcast %cst_192 : f32 to vector<2x32xf32>
    %341 = arith.select %337, %339, %340 : vector<2x32xi1>, vector<2x32xf32>
    %342 = arith.addf %326, %341 : vector<2x32xf32>
    %c0_193 = arith.constant 0 : index
    %c0_194 = arith.constant 0 : index
    %343 = vector.load %arg7[%c0_193, %c0_194] : memref<32x16xf32, #tpu.memory_space<vmem>>, vector<32x16xf32>
    %cst_195 = arith.constant dense<0.000000e+00> : vector<2x16xf32>
    %344 = tpu.matmul %342, %343, %cst_195 {dimension_numbers = #tpu.dot_dimension_numbers<[1], [0], [0], [1], [0, 0, 1, 1], [], []>} : vector<2x32xf32>, vector<32x16xf32>, vector<2x16xf32> -> vector<2x16xf32>
    %c0_196 = arith.constant 0 : index
    %c0_197 = arith.constant 0 : index
    %345 = vector.load %arg8[%c0_196, %c0_197] : memref<1x16xf32, #tpu.memory_space<vmem>>, vector<1x16xf32>
    %346 = vector.broadcast %345 : vector<1x16xf32> to vector<2x16xf32>
    %347 = arith.addf %344, %346 : vector<2x16xf32>
    %cst_198 = arith.constant dense<0.000000e+00> : vector<2xf32>
    %348 = vector.multi_reduction <add>, %347, %cst_198 [1] : vector<2x16xf32> to vector<2xf32>
    %349 = vector.shape_cast %348 : vector<2xf32> to vector<2x1xf32>
    %cst_199 = arith.constant 1.600000e+01 : f32
    %350 = vector.broadcast %cst_199 : f32 to vector<2x1xf32>
    %351 = arith.divf %349, %350 : vector<2x1xf32>
    %352 = vector.broadcast %351 : vector<2x1xf32> to vector<2x16xf32>
    %353 = arith.subf %347, %352 : vector<2x16xf32>
    %354 = arith.mulf %353, %353 : vector<2x16xf32>
    %cst_200 = arith.constant dense<0.000000e+00> : vector<2xf32>
    %355 = vector.multi_reduction <add>, %354, %cst_200 [1] : vector<2x16xf32> to vector<2xf32>
    %356 = vector.shape_cast %355 : vector<2xf32> to vector<2x1xf32>
    %cst_201 = arith.constant 1.600000e+01 : f32
    %357 = vector.broadcast %cst_201 : f32 to vector<2x1xf32>
    %358 = arith.divf %356, %357 : vector<2x1xf32>
    %359 = vector.broadcast %351 : vector<2x1xf32> to vector<2x16xf32>
    %360 = arith.subf %347, %359 : vector<2x16xf32>
    %cst_202 = arith.constant 9.99999974E-6 : f32
    %361 = vector.broadcast %cst_202 : f32 to vector<2x1xf32>
    %362 = arith.addf %358, %361 : vector<2x1xf32>
    %363 = math.rsqrt %362 : vector<2x1xf32>
    %364 = vector.broadcast %363 : vector<2x1xf32> to vector<2x16xf32>
    %365 = arith.mulf %360, %364 : vector<2x16xf32>
    %c0_203 = arith.constant 0 : index
    %c0_204 = arith.constant 0 : index
    %366 = vector.load %arg9[%c0_203, %c0_204] : memref<1x16xf32, #tpu.memory_space<vmem>>, vector<1x16xf32>
    %367 = vector.broadcast %366 : vector<1x16xf32> to vector<2x16xf32>
    %368 = arith.mulf %365, %367 : vector<2x16xf32>
    %c0_205 = arith.constant 0 : index
    %c0_206 = arith.constant 0 : index
    %369 = vector.load %arg10[%c0_205, %c0_206] : memref<1x16xf32, #tpu.memory_space<vmem>>, vector<1x16xf32>
    %370 = vector.broadcast %369 : vector<1x16xf32> to vector<2x16xf32>
    %371 = arith.addf %368, %370 : vector<2x16xf32>
    %c0_207 = arith.constant 0 : index
    %c0_208 = arith.constant 0 : index
    %372 = vector.load %arg12[%c0_207, %c0_208] : memref<2x16xf32, #tpu.memory_space<vmem>>, vector<2x16xf32>
    tpu.vector_store %arg12[%c0_207, %c0_208], %371 {strides = array<i32>} : memref<2x16xf32, #tpu.memory_space<vmem>>, vector<2x16xf32>,
    %c0_209 = arith.constant 0 : index
    %c0_210 = arith.constant 0 : index
    %373 = vector.load %arg11[%c0_209, %c0_210] : memref<8x16xf32, #tpu.memory_space<vmem>>, vector<8x16xf32>
    %cst_211 = arith.constant dense<0.000000e+00> : vector<2x8xf32>
    %374 = tpu.matmul %371, %373, %cst_211 {dimension_numbers = #tpu.dot_dimension_numbers<[1], [1], [0], [0], [0, 0, 1, 0], [], []>} : vector<2x16xf32>, vector<8x16xf32>, vector<2x8xf32> -> vector<2x8xf32>
    %cst_212 = arith.constant 1.000000e+00 : f32
    %375 = vector.broadcast %cst_212 : f32 to vector<1x16xf32>
    %376 = arith.mulf %373, %373 : vector<8x16xf32>
    %cst_213 = arith.constant dense<0.000000e+00> : vector<1x8xf32>
    %377 = tpu.matmul %375, %376, %cst_213 {dimension_numbers = #tpu.dot_dimension_numbers<[1], [1], [0], [0], [0, 0, 1, 0], [], []>} : vector<1x16xf32>, vector<8x16xf32>, vector<1x8xf32> -> vector<1x8xf32>
    %378 = arith.mulf %371, %371 : vector<2x16xf32>
    %cst_214 = arith.constant dense<0.000000e+00> : vector<2xf32>
    %379 = vector.multi_reduction <add>, %378, %cst_214 [1] : vector<2x16xf32> to vector<2xf32>
    %380 = vector.shape_cast %379 : vector<2xf32> to vector<2x1xf32>
    %cst_215 = arith.constant 2.000000e+00 : f32
    %381 = vector.broadcast %cst_215 : f32 to vector<2x8xf32>
    %382 = arith.mulf %381, %374 : vector<2x8xf32>
    %383 = vector.broadcast %380 : vector<2x1xf32> to vector<2x8xf32>
    %384 = arith.subf %383, %382 : vector<2x8xf32>
    %385 = vector.broadcast %377 : vector<1x8xf32> to vector<2x8xf32>
    %386 = arith.addf %384, %385 : vector<2x8xf32>
    %cst_216 = arith.constant dense<0x7F800000> : vector<2xf32>
    %387 = vector.multi_reduction <minimumf>, %386, %cst_216 [1] : vector<2x8xf32> to vector<2xf32>
    %388 = vector.shape_cast %387 : vector<2xf32> to vector<2x1xf32>
    %389 = tpu.iota {dimensions = array<i32: 1>} : vector<2x8xi32>
    %390 = vector.broadcast %388 : vector<2x1xf32> to vector<2x8xf32>
    %391 = arith.cmpf oeq, %386, %390 : vector<2x8xf32>
    %c8_i32 = arith.constant 8 : i32
    %392 = vector.broadcast %c8_i32 : i32 to vector<2x8xi32>
    %393 = arith.select %391, %389, %392 : vector<2x8xi1>, vector<2x8xi32>
    %cst_217 = arith.constant dense<2147483647> : vector<2xi32>
    %394 = vector.multi_reduction <minsi>, %393, %cst_217 [1] : vector<2x8xi32> to vector<2xi32>
    %395 = vector.shape_cast %394 : vector<2xi32> to vector<2x1xi32>
    %396 = vector.broadcast %395 : vector<2x1xi32> to vector<2x8xi32>
    %397 = arith.cmpi eq, %389, %396 : vector<2x8xi32>
    %398 = arith.extui %397 : vector<2x8xi1> to vector<2x8xi32>
    %399 = arith.sitofp %398 : vector<2x8xi32> to vector<2x8xf32>
    %cst_218 = arith.constant dense<0.000000e+00> : vector<2x16xf32>
    %400 = tpu.matmul %399, %373, %cst_218 {dimension_numbers = #tpu.dot_dimension_numbers<[1], [0], [0], [1], [0, 0, 1, 1], [], []>} : vector<2x8xf32>, vector<8x16xf32>, vector<2x16xf32> -> vector<2x16xf32>
    %c0_219 = arith.constant 0 : index
    %c0_220 = arith.constant 0 : index
    %401 = vector.load %arg13[%c0_219, %c0_220] : memref<2x16xf32, #tpu.memory_space<vmem>>, vector<2x16xf32>
    tpu.vector_store %arg13[%c0_219, %c0_220], %400 {strides = array<i32>} : memref<2x16xf32, #tpu.memory_space<vmem>>, vector<2x16xf32>,
    %402 = arith.subf %400, %371 : vector<2x16xf32>
    %403 = arith.mulf %402, %402 : vector<2x16xf32>
    %404 = vector.shape_cast %403 : vector<2x16xf32> to vector<1x2x16xf32>
    %cst_221 = arith.constant dense<0.000000e+00> : vector<1xf32>
    %405 = vector.multi_reduction <add>, %404, %cst_221 [1, 2] : vector<1x2x16xf32> to vector<1xf32>
    %406 = vector.shape_cast %405 : vector<1xf32> to vector<1x1x1xf32>
    %407 = vector.extract %406[0, 0, 0] : f32 from vector<1x1x1xf32>
    %408 = vector.broadcast %407 : f32 to vector<1x1xf32>
    %cst_222 = arith.constant 3.200000e+01 : f32
    %409 = vector.broadcast %cst_222 : f32 to vector<1x1xf32>
    %410 = arith.divf %408, %409 : vector<1x1xf32>
    %cst_223 = arith.constant 2.500000e-01 : f32
    %411 = vector.broadcast %cst_223 : f32 to vector<1x1xf32>
    %412 = arith.mulf %411, %410 : vector<1x1xf32>
    %c0_224 = arith.constant 0 : index
    %c0_225 = arith.constant 0 : index
    %413 = vector.load %arg14[%c0_224, %c0_225] : memref<1x1xf32, #tpu.memory_space<vmem>>, vector<1x1xf32>
    tpu.vector_store %arg14[%c0_224, %c0_225], %412 {strides = array<i32>} : memref<1x1xf32, #tpu.memory_space<vmem>>, vector<1x1xf32>,
    %cst_226 = arith.constant dense<0.000000e+00> : vector<8xf32>
    %414 = vector.multi_reduction <add>, %399, %cst_226 [0] : vector<2x8xf32> to vector<8xf32>
    %415 = vector.shape_cast %414 : vector<8xf32> to vector<1x8xf32>
    %cst_227 = arith.constant 2.000000e+00 : f32
    %416 = vector.broadcast %cst_227 : f32 to vector<1x8xf32>
    %417 = arith.divf %415, %416 : vector<1x8xf32>
    %cst_228 = arith.constant 1.000000e-10 : f32
    %418 = vector.broadcast %cst_228 : f32 to vector<1x8xf32>
    %419 = arith.addf %417, %418 : vector<1x8xf32>
    %420 = math.log %419 : vector<1x8xf32>
    %421 = arith.mulf %417, %420 : vector<1x8xf32>
    %cst_229 = arith.constant dense<0.000000e+00> : vector<1xf32>
    %422 = vector.multi_reduction <add>, %421, %cst_229 [1] : vector<1x8xf32> to vector<1xf32>
    %423 = vector.shape_cast %422 : vector<1xf32> to vector<1x1xf32>
    %cst_230 = arith.constant 0.000000e+00 : f32
    %424 = vector.broadcast %cst_230 : f32 to vector<1x1xf32>
    %425 = arith.subf %424, %423 : vector<1x1xf32>
    %426 = math.exp %425 : vector<1x1xf32>
    %c0_231 = arith.constant 0 : index
    %c0_232 = arith.constant 0 : index
    %427 = vector.load %arg15[%c0_231, %c0_232] : memref<1x1xf32, #tpu.memory_space<vmem>>, vector<1x1xf32>
    tpu.vector_store %arg15[%c0_231, %c0_232], %426 {strides = array<i32>} : memref<1x1xf32, #tpu.memory_space<vmem>>, vector<1x1xf32>,
    return
  }
}

</mosaic_0001>

<bundles_post_ra>
// kernel: vq_conv_encoder_forward.1
= control target key start
LH: loop header
LB: loop body
LE: loop exit
PB: predicated region body
PF: predicated region fallthrough
CT: control target
= control target key end

     0   :  { %21 = vsyncpa [#allocation5], 0  ;;  %s1814_s0 = inlined_call_operand.vmem [shape: f32[2,4,16], index: 0, kind: input, shape index: {}]   ;;  %s1815_s1 = inlined_call_operand.vmem [shape: f32[4,32], index: 1, kind: input, shape index: {}]   ;;  %s1816_s2 = inlined_call_operand.vmem [shape: f32[1,32], index: 2, kind: input, shape index: {}]   ;;  %s1817_s3 = inlined_call_operand.hbm [shape: f32[3,32,32], index: 3, kind: input, shape index: {}]   ;;  %s1818_s4 = inlined_call_operand.vmem [shape: f32[1,32], index: 4, kind: input, shape index: {}]   ;;  %s1819_s5 = inlined_call_operand.hbm [shape: f32[3,32,32], index: 5, kind: input, shape index: {}]   ;;  %s1820_s6 = inlined_call_operand.vmem [shape: f32[1,32], index: 6, kind: input, shape index: {}]   ;;  %s1821_s7 = inlined_call_operand.vmem [shape: f32[32,16], index: 7, kind: input, shape index: {}]   ;;  %s1822_s8 = inlined_call_operand.vmem [shape: f32[1,16], index: 8, kind: input, shape index: {}]   ;;  %s1823_s9 = inlined_call_operand.vmem [shape: f32[1,16], index: 9, kind: input, shape index: {}]   ;;  %s1824_s10 = inlined_call_operand.vmem [shape: f32[1,16], index: 10, kind: input, shape index: {}]   ;;  %s1825_s11 = inlined_call_operand.vmem [shape: f32[8,16], index: 11, kind: input, shape index: {}]   ;;  %s1826_s12 = inlined_call_operand.hbm [shape: f32[2,16], index: 12, kind: output, shape index: {0}]   ;;  %s1827_s13 = inlined_call_operand.hbm [shape: f32[2,16], index: 13, kind: output, shape index: {1}]   ;;  %s1828_s14 = inlined_call_operand.hbm [shape: f32[1,1], index: 14, kind: output, shape index: {2}]   ;;  %s1829_s15 = inlined_call_operand.hbm [shape: f32[1,1], index: 15, kind: output, shape index: {3}]  }
   0x1   :  { %22 = vsyncpa [#allocation8], 0 }
   0x2   :  { %23 = vsyncpa [#allocation6], 0 }
   0x3   :  { %24 = vsyncpa [#allocation11], 0 }
   0x4   :  { %25 = vsyncpa [#allocation14], 0  ;;  %s36_s20 = sshll.u32 %s1817_s3, 4  ;;  %s1469_s21 = smov [#allocation4]   ;;  %s37_s20 = int_to_ptr.hbm [resolvable:$true] %s36_s20 }
   0x5   :  { %s38_s22 = sshll.u32 %s1469_s21, 4  ;;  %s51_s25 = sshll.u32 %s1819_s5, 4  ;;  %s39_s22 = int_to_ptr.vmem [resolvable:$true] %s38_s22  ;;  %s52_s25 = int_to_ptr.hbm [resolvable:$true] %s51_s25 }
   0x6   :  { %s1470_s26 = smov 128   ;;  %s1471_s27 = smov 8  }
   0x7   :  { %44 = dma.hbm_to_vmem [thread:$0]  %s37_s20, 1536, %s39_s22, [#allocation5], %s1470_s26, %s1470_s26, %s1471_s27  }
   0x8   :  { %s1472_s28 = smov [#allocation7]  }
   0x9   :  { %s53_s29 = sshll.u32 %s1472_s28, 4  ;;  %s54_s29 = int_to_ptr.vmem [resolvable:$true] %s53_s29 }
   0xa   :  { %59 = dma.hbm_to_vmem [thread:$0]  %s52_s25, 1536, %s54_s29, [#allocation8], %s1470_s26, %s1470_s26, %s1471_s27  }
   0xb   :  { %1459 = dma.done.wait [#allocation5], 1536  }
   0xc   :  { %1460 = vsyncadd [#allocation5], 4294965760 }
   0xd   :  { %1461 = dma.done.wait [#allocation8], 1536  }
   0xe   :  { %1462 = vsyncadd [#allocation8], 4294965760  ;;  %vm84_vm0 = vcmask 261120   ;;  %v1473_v0 = vmov 0.0   ;;  %vm135_vm1 = vcmask 1043456   ;;  %vm128_vm2 = vcmask 31744  }
   0xf   :  { %85 = vst.msk [vmem:[#allocation2] sm:$0xff] %vm84_vm0, %v1473_v0  ;;  %v80_v1 = vld [vmem:[%s1814_s0] sm:$0xf]  ;;  %v81_v3 = vld [vmem:[%s1814_s0 + $0x4] sm:$0xf]  ;;  %v235_v8 = vld [vmem:[#allocation4 + $0x38] sm:$0xff] }
  0x10   :  { %86 = vst.msk [vmem:[#allocation2 + $0x8] sm:$0xff] %vm84_vm0, %v1473_v0  ;;  %96 = vxpose.xlu0.b32.start.end [1/1] (short) (narrow) %v80_v1, 16  ;;  %v82_v2 = vld [vmem:[%s1815_s1] sm:$0xf]  ;;  %v234_v9 = vld [vmem:[#allocation4 + $0x30] sm:$0xff]  ;;  %v231_v10 = vld [vmem:[#allocation4 + $0x18] sm:$0xff]  ;;  %271 = vmatpush.msra.mxu2 %v235_v8 }
  0x11   :  { %87 = vst.msk [vmem:[#allocation2 + $0x10] sm:$0xff] %vm84_vm0, %v1473_v0  ;;  %1248 = vmatpush.msk.msra.mxu0 %vm135_vm1, %v82_v2  ;;  %1251 = vmatpush.msk.msra.mxu1 %vm135_vm1, %v82_v2  ;;  %v233_v11 = vld [vmem:[#allocation4 + $0x28] sm:$0xff]  ;;  %v230_v12 = vld [vmem:[#allocation4 + $0x10] sm:$0xff]  ;;  %v232_v13 = vld [vmem:[#allocation4 + $0x20] sm:$0xff]  ;;  %vm283_vm3 = vcmask 1040384   ;;  %vm317_vm4 = vcmask 1046528  }
  0x12   :  { %88 = vst.msk [vmem:[#allocation2 + $0x18] sm:$0xff] %vm84_vm0, %v1473_v0  ;;  %305 = vmatpush.msra.mxu3 %v231_v10  ;;  %272 = vmatpush.msra.mxu2 %v234_v9  ;;  %v229_v14 = vld [vmem:[#allocation4 + $0x8] sm:$0xff]  ;;  %v228_v16 = vld [vmem:[#allocation4] sm:$0xff]  ;;  %v239_v17 = vld [vmem:[#allocation4 + $0x58] sm:$0xff]  ;;  %v1474_v57 = vmov 2.0   ;;  %vm359_vm5 = vcmask 254976  }
  0x13   :  { %89 = vst.msk [vmem:[#allocation2 + $0x20] sm:$0xff] %vm84_vm0, %v1473_v0  ;;  %476 = vmatpush.msrb.mxu1 %v235_v8  ;;  %339 = vmatpush.msrb.mxu0 %v239_v17  ;;  %v238_v18 = vld [vmem:[#allocation4 + $0x50] sm:$0xff]  ;;  %v237_v19 = vld [vmem:[#allocation4 + $0x48] sm:$0xff]  ;;  %v236_v21 = vld [vmem:[#allocation4 + $0x40] sm:$0xff]  ;;  %1301 = vrcp.f32 %v1474_v57  ;;  %vm375_vm7 = vcmask 253952   ;;  %vm922_vm8 = vcmask 257024  }
  0x14   :  { %90 = vst.msk [vmem:[#allocation2 + $0x28] sm:$0xff] %vm84_vm0, %v1473_v0  ;;  %273 = vmatpush.msra.mxu2 %v233_v11  ;;  %306 = vmatpush.msra.mxu3 %v230_v12  ;;  %v1295_v23 = vld [vmem:[%s1816_s2] ss:$0 sm:$0xff]  ;;  %vm985_vm12 = vcmask 123904   ;;  %vm1027_vm14 = vcmask 130048   ;;  %s1201_s16 = sshll.u32 %s1827_s13, 4  ;;  %s1202_s16 = int_to_ptr.hbm [resolvable:$true] %s1201_s16 }
  0x15   :  { %91 = vst.msk [vmem:[#allocation2 + $0x30] sm:$0xff] %vm84_vm0, %v1473_v0  ;;  %477 = vmatpush.msrb.mxu1 %v234_v9  ;;  %340 = vmatpush.msrb.mxu0 %v238_v18  ;;  %v1655_v63 = vld [vmem:[%s1818_s4] ss:$0 sm:$0xff]  ;;  %v653_v9 = vld [vmem:[#allocation7 + $0x38] sm:$0xff]  ;;  %s1478_s1 = smov [#allocation10]   ;;  %s1479_s0 = smov [#allocation9]  }
  0x16   :  { %92 = vst.msk [vmem:[#allocation2 + $0x38] sm:$0xff] %vm84_vm0, %v1473_v0  ;;  %274 = vmatpush.msra.mxu2 %v232_v13  ;;  %v249_v15 = vld [vmem:[#allocation2] sm:$0xff]  ;;  %307 = vmatpush.msra.mxu3 %v229_v14  ;;  %s1199_s17 = sshll.u32 %s1478_s1, 4  ;;  %s1188_s18 = sshll.u32 %s1479_s0, 4  ;;  %s1200_s17 = int_to_ptr.vmem [resolvable:$true] %s1199_s17  ;;  %s1189_s18 = int_to_ptr.vmem [resolvable:$true] %s1188_s18 }
  0x17   :  { %241 = vst.msk [vmem:[#allocation3] sm:$0xff] %vm84_vm0, %v1473_v0  ;;  %478 = vmatpush.msrb.mxu1 %v233_v11  ;;  %341 = vmatpush.msrb.mxu0 %v237_v19  ;;  %v284_v29 = vrot.slane %v249_v15, 7  ;;  %s1190_s4 = sshll.u32 %s1826_s12, 4  ;;  %s1480_s20 = smov [#allocation13]   ;;  %s1191_s4 = int_to_ptr.hbm [resolvable:$true] %s1190_s4 }
  0x18   :  { %242 = vst.msk [vmem:[#allocation3 + $0x8] sm:$0xff] %vm84_vm0, %v1473_v0  ;;  %509 = vmatpush.msrb.mxu2 %v231_v10  ;;  %308 = vmatpush.msra.mxu3 %v228_v16  ;;  %s1223_s13 = sshll.u32 %s1829_s15, 4  ;;  %s1482_s15 = smov [#allocation12]   ;;  %s1224_s13 = int_to_ptr.hbm [resolvable:$true] %s1223_s13 }
  0x19   :  { %243 = vst.msk [vmem:[#allocation3 + $0x10] sm:$0xff] %vm84_vm0, %v1473_v0  ;;  %479 = vmatpush.msrb.mxu1 %v232_v13  ;;  %v252_v20 = vld [vmem:[#allocation2 + $0x18] sm:$0xff]  ;;  %342 = vmatpush.msrb.mxu0 %v236_v21  ;;  %v1649_v58 = vpop.eup %1301  ;;  %s1210_s23 = sshll.u32 %s1482_s15, 4  ;;  %s1212_s26 = sshll.u32 %s1828_s14, 4  ;;  %s1211_s23 = int_to_ptr.vmem [resolvable:$true] %s1210_s23  ;;  %s1213_s26 = int_to_ptr.hbm [resolvable:$true] %s1212_s26 }
  0x1a   :  { %245 = vst.msk [vmem:[#allocation3 + $0x20] sm:$0xff] %vm84_vm0, %v1473_v0  ;;  %510 = vmatpush.msrb.mxu2 %v230_v12  ;;  %542 = vmatpush.msrb.mxu3 %v239_v17  ;;  %v454_v22 = vld [vmem:[#allocation2 + $0x20] sm:$0xff]  ;;  %v321_v43 = vrot.slane %v252_v20, 1  ;;  %v368_v61 = vmul.f32 2.0, %v1649_v58  ;;  %v652_v17 = vld [vmem:[#allocation7 + $0x30] sm:$0xff]  ;;  %vm372_vm6 = vweird.f32 %v1649_v58 }
  0x1b   :  { %246 = vst.msk [vmem:[#allocation3 + $0x28] sm:$0xff] %vm84_vm0, %v1473_v0  ;;  %v488_v44 = vrot.slane %v454_v22, 7  ;;  %v657_v22 = vld [vmem:[#allocation7 + $0x58] sm:$0xff] }
  0x1c   :  { %247 = vst.msk [vmem:[#allocation3 + $0x30] sm:$0xff] %vm84_vm0, %v1473_v0  ;;  %511 = vmatpush.msrb.mxu2 %v229_v14  ;;  %543 = vmatpush.msrb.mxu3 %v238_v18 }
  0x1d   :  { %659 = vst.msk [vmem:[#allocation2] sm:$0xff] %vm84_vm0, %v1473_v0  ;;  %v457_v26 = vld [vmem:[#allocation2 + $0x38] sm:$0xff] }
  0x1e   :  { %512 = vmatpush.msrb.mxu2 %v228_v16  ;;  %662 = vst.msk [vmem:[#allocation2 + $0x18] sm:$0xff] %vm84_vm0, %v1473_v0  ;;  %544 = vmatpush.msrb.mxu3 %v237_v19  ;;  %v524_v55 = vrot.slane %v457_v26, 1 }
  0x1f   :  { %663 = vst.msk [vmem:[#allocation2 + $0x20] sm:$0xff] %vm84_vm0, %v1473_v0 }
  0x20   :  { %164 = vxpose.xlu0.b32.start.end [1/1] (short) (narrow) %v81_v3, 16  ;;  %545 = vmatpush.msrb.mxu3 %v236_v21  ;;  %666 = vst.msk [vmem:[#allocation2 + $0x38] sm:$0xff] %vm84_vm0, %v1473_v0  ;;  %v369_v3 = vsub.f32 1.0, %v368_v61  ;;  %v649_v21 = vld [vmem:[#allocation7 + $0x18] sm:$0xff] }
  0xb4   :  { %v112_v4 = vpop.trf.xlu0 }
  0xb5   :  { %1249 = vmatmul.msk.f32.vlgmr.msra.gmra.mxu0 %vm128_vm2, %v112_v4 }
  0xb6   :  { %685 = vmatpush.msra.mxu0 %v653_v9 }
  0xb8   :  { %686 = vmatpush.msra.mxu0 %v652_v17 }
  0xbc   :  { %v113_v5 = vpop.trf.xlu0 }
  0xbd   :  { %1250 = vmatmul.msk.f32.gmra.mxu0 %vm128_vm2, %v113_v5 }
  0xc4   :  { %v180_v6 = vpop.trf.xlu0 }
  0xc5   :  { %1252 = vmatmul.msk.f32.vlgmr.msra.gmra.mxu1 %vm128_vm2, %v180_v6  ;;  %v370_v6 = vmul.f32 %v1649_v58, %v369_v3 }
  0xc6   :  { %711 = vmatpush.msra.mxu1 %v649_v21 }
  0xcc   :  { %v181_v7 = vpop.trf.xlu0 }
  0xcd   :  { %1253 = vmatmul.msk.f32.gmra.mxu1 %vm128_vm2, %v181_v7  ;;  %vm1089_vm2 = vcmask 58368  }
 0x132   :  { %v156_v24 = vpop.f32.mrf.mxu0 }
 0x133   :  { %v157_v25 = vadd.f32 %v1295_v23, %v156_v24 }
 0x135   :  { %162 = vst.msk [vmem:[#allocation2 + $0x8] sm:$0xff] %vm84_vm0, %v157_v25 }
 0x13a   :  { %v159_v27 = vpop.f32.mrf.mxu0 }
 0x13b   :  { %v160_v28 = vadd.f32 %v1295_v23, %v159_v27  ;;  %v651_v27 = vld [vmem:[#allocation7 + $0x28] sm:$0xff] }
 0x13c   :  { %v250_v30 = vld [vmem:[#allocation2 + $0x8] sm:$0xff]  ;;  %687 = vmatpush.msra.mxu0 %v651_v27 }
 0x13d   :  { %163 = vst.msk [vmem:[#allocation2 + $0x10] sm:$0xff] %vm84_vm0, %v160_v28  ;;  %1254 = vmatmul.msk.f32.vlgmr.msra.gmra.mxu2 %vm84_vm0, %v250_v30  ;;  %v285_v31 = vrot.slane %v250_v30, 7  ;;  %v318_v36 = vrot.slane %v250_v30, 1  ;;  %v371_v28 = vadd.f32 %v1649_v58, %v370_v6  ;;  %v648_v30 = vld [vmem:[#allocation7 + $0x10] sm:$0xff] }
 0x13e   :  { %660 = vst.msk [vmem:[#allocation2 + $0x8] sm:$0xff] %vm84_vm0, %v1473_v0  ;;  %737 = vmatpush.msra.mxu2 %v657_v22  ;;  %712 = vmatpush.msra.mxu1 %v648_v30 }
 0x13f   :  { %v286_v32 = vsel %vm283_vm3, %v284_v29, %v285_v31 }
 0x140   :  { %1256 = vmatmul.msk.f32.vlgmr.msra.gmra.mxu3 %vm84_vm0, %v286_v32 }
 0x141   :  { %812 = vmatpush.msra.mxu3 %v653_v9 }
 0x142   :  { %v219_v33 = vpop.f32.mrf.mxu1 }
 0x143   :  { %v220_v34 = vadd.f32 %v1295_v23, %v219_v33  ;;  %813 = vmatpush.msra.mxu3 %v652_v17 }
 0x144   :  { %v251_v35 = vld [vmem:[#allocation2 + $0x10] sm:$0xff] }
 0x145   :  { %226 = vst.msk [vmem:[#allocation2 + $0x28] sm:$0xff] %vm84_vm0, %v220_v34  ;;  %1255 = vmatmul.msk.f32.gmra.mxu2 %vm84_vm0, %v251_v35  ;;  %v319_v37 = vrot.slane %v251_v35, 1  ;;  %v287_v38 = vrot.slane %v251_v35, 7  ;;  %814 = vmatpush.msra.mxu3 %v651_v27 }
 0x146   :  { %661 = vst.msk [vmem:[#allocation2 + $0x10] sm:$0xff] %vm84_vm0, %v1473_v0 }
 0x147   :  { %v288_v39 = vsel %vm283_vm3, %v285_v31, %v287_v38  ;;  %v320_v40 = vsel %vm317_vm4, %v318_v36, %v319_v37  ;;  %v322_v47 = vsel %vm317_vm4, %v319_v37, %v321_v43  ;;  %v656_v31 = vld [vmem:[#allocation7 + $0x50] sm:$0xff]  ;;  %v650_v36 = vld [vmem:[#allocation7 + $0x20] sm:$0xff] }
 0x148   :  { %1257 = vmatmul.msk.f32.gmra.mxu3 %vm84_vm0, %v288_v39  ;;  %1258 = vmatmul.msk.f32.vlgmr.msrb.gmra.mxu0 %vm84_vm0, %v320_v40 }
 0x149   :  { %738 = vmatpush.msra.mxu2 %v656_v31  ;;  %688 = vmatpush.msra.mxu0 %v650_v36 }
 0x14a   :  { %v222_v41 = vpop.f32.mrf.mxu1  ;;  %815 = vmatpush.msra.mxu3 %v650_v36 }
 0x14b   :  { %v223_v42 = vadd.f32 %v1295_v23, %v222_v41  ;;  %838 = vmatpush.msrb.mxu0 %v649_v21 }
 0x14c   :  { %v455_v45 = vld [vmem:[#allocation2 + $0x28] sm:$0xff] }
 0x14d   :  { %227 = vst.msk [vmem:[#allocation2 + $0x30] sm:$0xff] %vm84_vm0, %v223_v42  ;;  %1260 = vmatmul.msk.f32.vlgmr.msrb.gmra.mxu1 %vm84_vm0, %v455_v45  ;;  %v489_v46 = vrot.slane %v455_v45, 7  ;;  %v521_v50 = vrot.slane %v455_v45, 1  ;;  %v655_v45 = vld [vmem:[#allocation7 + $0x48] sm:$0xff]  ;;  %839 = vmatpush.msrb.mxu0 %v648_v30 }
 0x14e   :  { %664 = vst.msk [vmem:[#allocation2 + $0x28] sm:$0xff] %vm84_vm0, %v1473_v0  ;;  %739 = vmatpush.msra.mxu2 %v655_v45 }
 0x14f   :  { %v490_v48 = vsel %vm283_vm3, %v488_v44, %v489_v46  ;;  %v647_v44 = vld [vmem:[#allocation7 + $0x8] sm:$0xff] }
 0x150   :  { %1259 = vmatmul.msk.f32.gmra.mxu0 %vm84_vm0, %v322_v47  ;;  %1262 = vmatmul.msk.f32.vlgmr.msrb.gmra.mxu2 %vm84_vm0, %v490_v48 }
 0x151   :  { %713 = vmatpush.msra.mxu1 %v647_v44  ;;  %840 = vmatpush.msrb.mxu0 %v647_v44 }
 0x154   :  { %v456_v49 = vld [vmem:[#allocation2 + $0x30] sm:$0xff] }
 0x155   :  { %1261 = vmatmul.msk.f32.gmra.mxu1 %vm84_vm0, %v456_v49  ;;  %v522_v51 = vrot.slane %v456_v49, 1  ;;  %665 = vst.msk [vmem:[#allocation2 + $0x30] sm:$0xff] %vm84_vm0, %v1473_v0  ;;  %v491_v52 = vrot.slane %v456_v49, 7 }
 0x157   :  { %v492_v53 = vsel %vm283_vm3, %v489_v46, %v491_v52  ;;  %v523_v54 = vsel %vm317_vm4, %v521_v50, %v522_v51  ;;  %v525_v56 = vsel %vm317_vm4, %v522_v51, %v524_v55  ;;  %v1669_v46 = vsel %vm372_vm6, %v1649_v58, %v371_v28 }
 0x158   :  { %1263 = vmatmul.msk.f32.gmra.mxu2 %vm84_vm0, %v492_v53  ;;  %1264 = vmatmul.msk.f32.vlgmr.msrb.gmra.mxu3 %vm84_vm0, %v523_v54  ;;  %v646_v53 = vld [vmem:[#allocation7] sm:$0xff] }
 0x159   :  { %v654_v54 = vld [vmem:[#allocation7 + $0x40] sm:$0xff]  ;;  %714 = vmatpush.msra.mxu1 %v646_v53  ;;  %841 = vmatpush.msrb.mxu0 %v646_v53 }
 0x15a   :  { %740 = vmatpush.msra.mxu2 %v654_v54 }
 0x15b   :  { %864 = vmatpush.msrb.mxu1 %v657_v22 }
 0x15d   :  { %865 = vmatpush.msrb.mxu1 %v656_v31 }
 0x15f   :  { %866 = vmatpush.msrb.mxu1 %v655_v45 }
 0x160   :  { %1265 = vmatmul.msk.f32.gmra.mxu3 %vm84_vm0, %v525_v56 }
 0x161   :  { %867 = vmatpush.msrb.mxu1 %v654_v54 }
 0x1c0   :  { %v276_v59 = vpop.f32.mrf.mxu2 }
 0x1c3   :  { %v310_v60 = vpop.f32.mrf.mxu3 }
 0x1c4   :  { %v311_v62 = vadd.f32 %v310_v60, %v276_v59 }
 0x1c5   :  { %v344_v1 = vpop.f32.mrf.mxu0 }
 0x1c6   :  { %v350_v2 = vadd.f32 %v344_v1, %v311_v62 }
 0x1c8   :  { %v355_v4 = vadd.f32 %v1655_v63, %v350_v2  ;;  %v279_v7 = vpop.f32.mrf.mxu2 }
 0x1ca   :  { %v357_v5 = vmax.f32 %v355_v4, 0.0  ;;  %v481_v42 = vpop.f32.mrf.mxu1 }
 0x1cb   :  { %v313_v8 = vpop.f32.mrf.mxu3 }
 0x1cc   :  { %v360_v10 = vsel %vm359_vm5, %v357_v5, 0.0  ;;  %v378_v11 = vrot.slane %v357_v5, 2  ;;  %v389_v12 = vrot.slane %v357_v5, 4  ;;  %v400_v13 = vrot.slane %v357_v5, 6 }
 0x1cd   :  { %v361_v14 = vrot.slane %v360_v10, 4  ;;  %v314_v15 = vadd.f32 %v313_v8, %v279_v7  ;;  %v347_v16 = vpop.f32.mrf.mxu0 }
 0x1ce   :  { %v380_v18 = vsel %vm359_vm5, %v378_v11, 0.0  ;;  %v391_v19 = vsel %vm359_vm5, %v389_v12, 0.0  ;;  %v402_v20 = vsel %vm359_vm5, %v400_v13, 0.0 }
 0x1cf   :  { %v362_v23 = vadd.f32 %v361_v14, %v360_v10  ;;  %v381_v24 = vrot.slane %v380_v18, 4  ;;  %v392_v25 = vrot.slane %v391_v19, 4  ;;  %v403_v26 = vrot.slane %v402_v20, 4 }
 0x1d0   :  { %v351_v29 = vadd.f32 %v347_v16, %v314_v15 }
 0x1d1   :  { %v363_v32 = vrot.slane %v362_v23, 2  ;;  %v382_v33 = vadd.f32 %v381_v24, %v380_v18  ;;  %v393_v34 = vadd.f32 %v392_v25, %v391_v19  ;;  %v404_v35 = vadd.f32 %v403_v26, %v402_v20 }
 0x1d2   :  { %v356_v37 = vadd.f32 %v1655_v63, %v351_v29 }
 0x1d3   :  { %v364_v38 = vadd.f32 %v363_v32, %v362_v23  ;;  %v383_v39 = vrot.slane %v382_v33, 2  ;;  %v394_v40 = vrot.slane %v393_v34, 2  ;;  %v405_v41 = vrot.slane %v404_v35, 2  ;;  %v514_v43 = vpop.f32.mrf.mxu2  ;;  %v484_v32 = vpop.f32.mrf.mxu1 }
 0x1d4   :  { %v358_v47 = vmax.f32 %v356_v37, 0.0  ;;  %v515_v48 = vadd.f32 %v514_v43, %v481_v42 }
 0x1d5   :  { %v365_v49 = vrot.slane %v364_v38, 1  ;;  %v384_v50 = vadd.f32 %v383_v39, %v382_v33  ;;  %v395_v51 = vadd.f32 %v394_v40, %v393_v34  ;;  %v406_v52 = vadd.f32 %v405_v41, %v404_v35 }
 0x1d6   :  { %v411_v55 = vsel %vm359_vm5, %v358_v47, 0.0  ;;  %v421_v56 = vrot.slane %v358_v47, 2  ;;  %v432_v57 = vrot.slane %v358_v47, 4  ;;  %v443_v59 = vrot.slane %v358_v47, 6 }
 0x1d7   :  { %v366_v58 = vadd.f32 %v365_v49, %v364_v38  ;;  %v385_v60 = vrot.slane %v384_v50, 1  ;;  %v396_v61 = vrot.slane %v395_v51, 1  ;;  %v407_v62 = vrot.slane %v406_v52, 1 }
 0x1d8   :  { %v412_v1 = vrot.slane %v411_v55, 4  ;;  %v423_v2 = vsel %vm359_vm5, %v421_v56, 0.0  ;;  %v434_v3 = vsel %vm359_vm5, %v432_v57, 0.0  ;;  %v445_v4 = vsel %vm359_vm5, %v443_v59, 0.0 }
 0x1d9   :  { %v374_v5 = vmul.f32 %v1669_v46, %v366_v58  ;;  %v386_v6 = vadd.f32 %v385_v60, %v384_v50  ;;  %v397_v7 = vadd.f32 %v396_v61, %v395_v51  ;;  %v408_v8 = vadd.f32 %v407_v62, %v406_v52 }
 0x1da   :  { %v413_v9 = vadd.f32 %v412_v1, %v411_v55  ;;  %v424_v10 = vrot.slane %v423_v2, 4  ;;  %v435_v11 = vrot.slane %v434_v3, 4  ;;  %v446_v12 = vrot.slane %v445_v4, 4 }
 0x1db   :  { %376 = vst.msk [vmem:[#allocation3 + $0x8] sm:$0x1] %vm375_vm7, %v374_v5  ;;  %v387_v13 = vmul.f32 %v386_v6, %v1669_v46  ;;  %v398_v14 = vmul.f32 %v397_v7, %v1669_v46  ;;  %v409_v15 = vmul.f32 %v408_v8, %v1669_v46  ;;  %v547_v16 = vpop.f32.mrf.mxu3  ;;  %v517_v26 = vpop.f32.mrf.mxu2  ;;  %v669_v5 = vld [vmem:[#allocation3 + $0x10] sm:$0xff] }
 0x1dc   :  { %v414_v17 = vrot.slane %v413_v9, 2  ;;  %v425_v18 = vadd.f32 %v424_v10, %v423_v2  ;;  %v436_v19 = vadd.f32 %v435_v11, %v434_v3  ;;  %v447_v20 = vadd.f32 %v446_v12, %v445_v4  ;;  %v667_v4 = vld [vmem:[#allocation3] sm:$0xff] }
 0x1dd   :  { %388 = vst.msk [vmem:[#allocation3 + $0x9] sm:$0x1] %vm375_vm7, %v387_v13  ;;  %v553_v21 = vadd.f32 %v547_v16, %v515_v48  ;;  %v518_v33 = vadd.f32 %v517_v26, %v484_v32  ;;  %v694_v12 = vrot.slane %v667_v4, 7  ;;  %v721_v13 = vrot.slane %v669_v5, 1 }
 0x1de   :  { %399 = vst.msk [vmem:[#allocation3 + $0xa] sm:$0x1] %vm375_vm7, %v398_v14  ;;  %v415_v22 = vadd.f32 %v414_v17, %v413_v9  ;;  %v426_v23 = vrot.slane %v425_v18, 2  ;;  %v437_v24 = vrot.slane %v436_v19, 2  ;;  %v448_v25 = vrot.slane %v447_v20, 2 }
 0x1df   :  { %410 = vst.msk [vmem:[#allocation3 + $0xb] sm:$0x1] %vm375_vm7, %v409_v15  ;;  %v555_v27 = vadd.f32 %v1655_v63, %v553_v21 }
 0x1e0   :  { %v416_v28 = vrot.slane %v415_v22, 1  ;;  %v427_v29 = vadd.f32 %v426_v23, %v425_v18  ;;  %v438_v30 = vadd.f32 %v437_v24, %v436_v19  ;;  %v449_v31 = vadd.f32 %v448_v25, %v447_v20 }
 0x1e1   :  { %v557_v34 = vmax.f32 %v555_v27, 0.0 }
 0x1e2   :  { %v417_v35 = vadd.f32 %v416_v28, %v415_v22  ;;  %v428_v36 = vrot.slane %v427_v29, 1  ;;  %v439_v37 = vrot.slane %v438_v30, 1  ;;  %v450_v38 = vrot.slane %v449_v31, 1 }
 0x1e3   :  { %v559_v39 = vsel %vm359_vm5, %v557_v34, 0.0  ;;  %v570_v40 = vrot.slane %v557_v34, 2  ;;  %v581_v41 = vrot.slane %v557_v34, 4  ;;  %v592_v42 = vrot.slane %v557_v34, 6  ;;  %v550_v48 = vpop.f32.mrf.mxu3 }
 0x1e4   :  { %v418_v43 = vmul.f32 %v417_v35, %v1669_v46  ;;  %v429_v44 = vadd.f32 %v428_v36, %v427_v29  ;;  %v440_v45 = vadd.f32 %v439_v37, %v438_v30  ;;  %v451_v47 = vadd.f32 %v450_v38, %v449_v31 }
 0x1e5   :  { %v560_v49 = vrot.slane %v559_v39, 4  ;;  %v572_v50 = vsel %vm359_vm5, %v570_v40, 0.0  ;;  %v583_v51 = vsel %vm359_vm5, %v581_v41, 0.0  ;;  %v594_v52 = vsel %vm359_vm5, %v592_v42, 0.0 }
 0x1e6   :  { %419 = vst.msk [vmem:[#allocation3 + $0xc] sm:$0x1] %vm375_vm7, %v418_v43  ;;  %v430_v53 = vmul.f32 %v429_v44, %v1669_v46  ;;  %v441_v54 = vmul.f32 %v440_v45, %v1669_v46  ;;  %v452_v55 = vmul.f32 %v451_v47, %v1669_v46  ;;  %v573_v56 = vrot.slane %v572_v50, 4 }
 0x1e7   :  { %v561_v57 = vadd.f32 %v560_v49, %v559_v39  ;;  %v584_v59 = vrot.slane %v583_v51, 4  ;;  %v595_v58 = vrot.slane %v594_v52, 4  ;;  %v554_v60 = vadd.f32 %v550_v48, %v518_v33 }
 0x1e8   :  { %431 = vst.msk [vmem:[#allocation3 + $0xd] sm:$0x1] %vm375_vm7, %v430_v53  ;;  %v574_v61 = vadd.f32 %v573_v56, %v572_v50 }
 0x1e9   :  { %442 = vst.msk [vmem:[#allocation3 + $0xe] sm:$0x1] %vm375_vm7, %v441_v54  ;;  %v562_v62 = vrot.slane %v561_v57, 2  ;;  %v585_v1 = vadd.f32 %v584_v59, %v583_v51  ;;  %v596_v2 = vadd.f32 %v595_v58, %v594_v52  ;;  %v556_v3 = vadd.f32 %v1655_v63, %v554_v60 }
 0x1ea   :  { %453 = vst.msk [vmem:[#allocation3 + $0xf] sm:$0x1] %vm375_vm7, %v452_v55  ;;  %v575_v6 = vrot.slane %v574_v61, 2 }
 0x1eb   :  { %v563_v7 = vadd.f32 %v562_v62, %v561_v57  ;;  %v586_v8 = vrot.slane %v585_v1, 2  ;;  %v597_v9 = vrot.slane %v596_v2, 2  ;;  %v558_v10 = vmax.f32 %v556_v3, 0.0 }
 0x1ec   :  { %v576_v11 = vadd.f32 %v575_v6, %v574_v61  ;;  %v794_v6 = vld [vmem:[#allocation3 + $0x20] sm:$0xff] }
 0x1ed   :  { %v564_v14 = vrot.slane %v563_v7, 1  ;;  %v587_v15 = vadd.f32 %v586_v8, %v585_v1  ;;  %v598_v16 = vadd.f32 %v597_v9, %v596_v2  ;;  %v603_v17 = vsel %vm359_vm5, %v558_v10, 0.0 }
 0x1ee   :  { %v577_v18 = vrot.slane %v576_v11, 1  ;;  %v604_v19 = vrot.slane %v603_v17, 4  ;;  %v613_v63 = vrot.slane %v558_v10, 2  ;;  %v624_v20 = vrot.slane %v558_v10, 4 }
 0x1ef   :  { %v565_v21 = vadd.f32 %v564_v14, %v563_v7  ;;  %v588_v22 = vrot.slane %v587_v15, 1  ;;  %v599_v23 = vrot.slane %v598_v16, 1  ;;  %v635_v24 = vrot.slane %v558_v10, 6  ;;  %v796_v7 = vld [vmem:[#allocation3 + $0x30] sm:$0xff] }
 0x1f0   :  { %v578_v25 = vadd.f32 %v577_v18, %v576_v11  ;;  %v605_v26 = vadd.f32 %v604_v19, %v603_v17  ;;  %v615_v27 = vsel %vm359_vm5, %v613_v63, 0.0  ;;  %v626_v28 = vsel %vm359_vm5, %v624_v20, 0.0  ;;  %v1297_v18 = vld [vmem:[%s1820_s6] ss:$0 sm:$0xff]  ;;  %s1221_s6 = sshll.u32 %s1480_s20, 4  ;;  %s1222_s6 = int_to_ptr.vmem [resolvable:$true] %s1221_s6 }
 0x1f1   :  { %v566_v29 = vmul.f32 %v565_v21, %v1669_v46  ;;  %v589_v30 = vadd.f32 %v588_v22, %v587_v15  ;;  %v600_v31 = vadd.f32 %v599_v23, %v598_v16  ;;  %v616_v32 = vrot.slane %v615_v27, 4  ;;  %v668_v33 = vld [vmem:[#allocation3 + $0x8] sm:$0xff] }
 0x1f2   :  { %v579_v34 = vmul.f32 %v578_v25, %v1669_v46  ;;  %v606_v35 = vrot.slane %v605_v26, 2  ;;  %v627_v36 = vrot.slane %v626_v28, 4  ;;  %v637_v37 = vsel %vm359_vm5, %v635_v24, 0.0  ;;  %1266 = vmatmul.msk.f32.vlgmr.msra.gmra.mxu0 %vm84_vm0, %v668_v33 }
 0x1f3   :  { %568 = vst.msk [vmem:[#allocation3 + $0x28] sm:$0x1] %vm375_vm7, %v566_v29  ;;  %v590_v38 = vmul.f32 %v589_v30, %v1669_v46  ;;  %v601_v39 = vmul.f32 %v600_v31, %v1669_v46  ;;  %v617_v40 = vadd.f32 %v616_v32, %v615_v27  ;;  %v638_v41 = vrot.slane %v637_v37, 4 }
 0x1f4   :  { %580 = vst.msk [vmem:[#allocation3 + $0x29] sm:$0x1] %vm375_vm7, %v579_v34  ;;  %v607_v42 = vadd.f32 %v606_v35, %v605_v26  ;;  %v628_v43 = vadd.f32 %v627_v36, %v626_v28  ;;  %v695_v44 = vrot.slane %v668_v33, 7  ;;  %v720_v45 = vrot.slane %v668_v33, 1 }
 0x1f5   :  { %591 = vst.msk [vmem:[#allocation3 + $0x2a] sm:$0x1] %vm375_vm7, %v590_v38  ;;  %v618_v47 = vrot.slane %v617_v40, 2  ;;  %v639_v48 = vadd.f32 %v638_v41, %v637_v37  ;;  %v821_v8 = vrot.slane %v794_v6, 7  ;;  %v848_v9 = vrot.slane %v796_v7, 1 }
 0x1f6   :  { %602 = vst.msk [vmem:[#allocation3 + $0x2b] sm:$0x1] %vm375_vm7, %v601_v39  ;;  %v608_v49 = vrot.slane %v607_v42, 1  ;;  %v629_v50 = vrot.slane %v628_v43, 2  ;;  %v696_v51 = vsel %vm283_vm3, %v694_v12, %v695_v44  ;;  %v722_v52 = vsel %vm317_vm4, %v720_v45, %v721_v13 }
 0x1f7   :  { %v619_v53 = vadd.f32 %v618_v47, %v617_v40  ;;  %v640_v54 = vrot.slane %v639_v48, 2  ;;  %1267 = vmatmul.msk.f32.vlgmr.msra.gmra.mxu1 %vm84_vm0, %v696_v51  ;;  %1268 = vmatmul.msk.f32.vlgmr.msra.gmra.mxu2 %vm84_vm0, %v722_v52 }
 0x1f8   :  { %v609_v55 = vadd.f32 %v608_v49, %v607_v42  ;;  %v630_v56 = vadd.f32 %v629_v50, %v628_v43  ;;  %v957_v42 = vld [vmem:[%s1821_s7 + $0x18] sm:$0xff]  ;;  %v956_v43 = vld [vmem:[%s1821_s7 + $0x10] sm:$0xff]  ;;  %v955_v49 = vld [vmem:[%s1821_s7 + $0x8] sm:$0xff] }
 0x1f9   :  { %v620_v57 = vrot.slane %v619_v53, 1  ;;  %v641_v59 = vadd.f32 %v640_v54, %v639_v48  ;;  %977 = vmatpush.msrb.mxu2 %v957_v42 }
 0x1fa   :  { %v610_v58 = vmul.f32 %v609_v55, %v1669_v46  ;;  %v631_v60 = vrot.slane %v630_v56, 1 }
 0x1fb   :  { %v621_v61 = vadd.f32 %v620_v57, %v619_v53  ;;  %v642_v62 = vrot.slane %v641_v59, 1  ;;  %978 = vmatpush.msrb.mxu2 %v956_v43 }
 0x1fc   :  { %611 = vst.msk [vmem:[#allocation3 + $0x2c] sm:$0x1] %vm375_vm7, %v610_v58  ;;  %v632_v1 = vadd.f32 %v631_v60, %v630_v56  ;;  %v954_v56 = vld [vmem:[%s1821_s7] sm:$0xff] }
 0x1fd   :  { %v622_v2 = vmul.f32 %v621_v61, %v1669_v46  ;;  %v643_v3 = vadd.f32 %v642_v62, %v641_v59  ;;  %979 = vmatpush.msrb.mxu2 %v955_v49 }
 0x1fe   :  { %v633_v4 = vmul.f32 %v632_v1, %v1669_v46 }
 0x1ff   :  { %623 = vst.msk [vmem:[#allocation3 + $0x2d] sm:$0x1] %vm375_vm7, %v622_v2  ;;  %v644_v5 = vmul.f32 %v643_v3, %v1669_v46  ;;  %980 = vmatpush.msrb.mxu2 %v954_v56 }
 0x200   :  { %634 = vst.msk [vmem:[#allocation3 + $0x2e] sm:$0x1] %vm375_vm7, %v633_v4 }
 0x201   :  { %645 = vst.msk [vmem:[#allocation3 + $0x2f] sm:$0x1] %vm375_vm7, %v644_v5 }
 0x208   :  { %v795_v10 = vld [vmem:[#allocation3 + $0x28] sm:$0xff] }
 0x209   :  { %1269 = vmatmul.msk.f32.vlgmr.msra.gmra.mxu3 %vm84_vm0, %v795_v10  ;;  %v822_v11 = vrot.slane %v795_v10, 7  ;;  %v847_v12 = vrot.slane %v795_v10, 1 }
 0x20b   :  { %v823_v13 = vsel %vm283_vm3, %v821_v8, %v822_v11  ;;  %v849_v14 = vsel %vm317_vm4, %v847_v12, %v848_v9 }
 0x20c   :  { %1270 = vmatmul.msk.f32.vlgmr.msrb.gmra.mxu0 %vm84_vm0, %v823_v13  ;;  %1271 = vmatmul.msk.f32.vlgmr.msrb.gmra.mxu1 %vm84_vm0, %v849_v14 }
 0x26f   :  { %v690_v16 = vpop.f32.mrf.mxu0 }
 0x274   :  { %v716_v15 = vpop.f32.mrf.mxu1 }
 0x275   :  { %v717_v17 = vadd.f32 %v716_v15, %v690_v16 }
 0x27a   :  { %v742_v19 = vpop.f32.mrf.mxu2 }
 0x27b   :  { %v745_v63 = vadd.f32 %v742_v19, %v717_v17 }
 0x27d   :  { %v749_v20 = vadd.f32 %v1297_v18, %v745_v63 }
 0x27f   :  { %v750_v21 = vmax.f32 %v749_v20, 0.0 }
 0x281   :  { %v751_v22 = vsel %vm359_vm5, %v750_v21, 0.0  ;;  %v761_v23 = vrot.slane %v750_v21, 2  ;;  %v772_v24 = vrot.slane %v750_v21, 4  ;;  %v783_v25 = vrot.slane %v750_v21, 6 }
 0x282   :  { %v752_v26 = vrot.slane %v751_v22, 4 }
 0x283   :  { %v763_v27 = vsel %vm359_vm5, %v761_v23, 0.0  ;;  %v774_v28 = vsel %vm359_vm5, %v772_v24, 0.0  ;;  %v785_v29 = vsel %vm359_vm5, %v783_v25, 0.0 }
 0x284   :  { %v753_v30 = vadd.f32 %v752_v26, %v751_v22  ;;  %v764_v31 = vrot.slane %v763_v27, 4  ;;  %v775_v32 = vrot.slane %v774_v28, 4  ;;  %v786_v33 = vrot.slane %v785_v29, 4 }
 0x286   :  { %v754_v34 = vrot.slane %v753_v30, 2  ;;  %v765_v35 = vadd.f32 %v764_v31, %v763_v27  ;;  %v776_v36 = vadd.f32 %v775_v32, %v774_v28  ;;  %v787_v37 = vadd.f32 %v786_v33, %v785_v29 }
 0x288   :  { %v755_v38 = vadd.f32 %v754_v34, %v753_v30  ;;  %v766_v39 = vrot.slane %v765_v35, 2  ;;  %v777_v40 = vrot.slane %v776_v36, 2  ;;  %v788_v41 = vrot.slane %v787_v37, 2 }
 0x289   :  { %v843_v54 = vpop.f32.mrf.mxu0  ;;  %v869_v62 = vpop.f32.mrf.mxu1 }
 0x28a   :  { %v756_v44 = vrot.slane %v755_v38, 1  ;;  %v767_v45 = vadd.f32 %v766_v39, %v765_v35  ;;  %v778_v47 = vadd.f32 %v777_v40, %v776_v36  ;;  %v789_v48 = vadd.f32 %v788_v41, %v787_v37 }
 0x28b   :  { %v1475_v37 = vmov 4.0  }
 0x28c   :  { %v757_v50 = vadd.f32 %v756_v44, %v755_v38  ;;  %v768_v51 = vrot.slane %v767_v45, 1  ;;  %v779_v52 = vrot.slane %v778_v47, 1  ;;  %v790_v53 = vrot.slane %v789_v48, 1  ;;  %v817_v55 = vpop.f32.mrf.mxu3 }
 0x28d   :  { %v844_v57 = vadd.f32 %v843_v54, %v817_v55  ;;  %1303 = vrcp.f32 %v1475_v37 }
 0x28e   :  { %v758_v59 = vmul.f32 %v757_v50, %v1669_v46  ;;  %v769_v58 = vadd.f32 %v768_v51, %v767_v45  ;;  %v780_v60 = vadd.f32 %v779_v52, %v778_v47  ;;  %v791_v61 = vadd.f32 %v790_v53, %v789_v48 }
 0x28f   :  { %v872_v1 = vadd.f32 %v869_v62, %v844_v57 }
 0x290   :  { %759 = vst.msk [vmem:[#allocation2 + $0x8] sm:$0x1] %vm375_vm7, %v758_v59  ;;  %v770_v2 = vmul.f32 %v769_v58, %v1669_v46  ;;  %v781_v3 = vmul.f32 %v780_v60, %v1669_v46  ;;  %v792_v4 = vmul.f32 %v791_v61, %v1669_v46  ;;  %v918_v60 = vlaneseq }
 0x291   :  { %v873_v5 = vadd.f32 %v1297_v18, %v872_v1 }
 0x292   :  { %771 = vst.msk [vmem:[#allocation2 + $0x9] sm:$0x1] %vm375_vm7, %v770_v2 }
 0x293   :  { %782 = vst.msk [vmem:[#allocation2 + $0xa] sm:$0x1] %vm375_vm7, %v781_v3  ;;  %v874_v6 = vmax.f32 %v873_v5, 0.0  ;;  %v1304_v47 = vpop.eup %1303  ;;  %v919_v3 = vshrl.u32 %v918_v60, 7 }
 0x294   :  { %793 = vst.msk [vmem:[#allocation2 + $0xb] sm:$0x1] %vm375_vm7, %v792_v4  ;;  %v931_v49 = vmul.f32 4.0, %v1304_v47  ;;  %vm935_vm9 = vweird.f32 %v1304_v47 }
 0x295   :  { %v875_v7 = vsel %vm359_vm5, %v874_v6, 0.0  ;;  %v885_v8 = vrot.slane %v874_v6, 2  ;;  %v896_v9 = vrot.slane %v874_v6, 4  ;;  %v907_v10 = vrot.slane %v874_v6, 6 }
 0x296   :  { %v876_v11 = vrot.slane %v875_v7, 4  ;;  %v932_v51 = vsub.f32 1.0, %v931_v49  ;;  %vm938_vm10 = vcmp.eq.s32.totalorder %v919_v3, 0  ;;  %vm951_vm11 = vcmp.eq.s32.totalorder %v919_v3, 1 }
 0x297   :  { %v887_v12 = vsel %vm359_vm5, %v885_v8, 0.0  ;;  %v898_v13 = vsel %vm359_vm5, %v896_v9, 0.0  ;;  %v909_v14 = vsel %vm359_vm5, %v907_v10, 0.0  ;;  %vm1115_vm5 = vcmask 64512  }
 0x298   :  { %v877_v15 = vadd.f32 %v876_v11, %v875_v7  ;;  %v888_v16 = vrot.slane %v887_v12, 4  ;;  %v899_v17 = vrot.slane %v898_v13, 4  ;;  %v910_v18 = vrot.slane %v909_v14, 4 }
 0x299   :  { %v933_v55 = vmul.f32 %v1304_v47, %v932_v51 }
 0x29a   :  { %v878_v19 = vrot.slane %v877_v15, 2  ;;  %v889_v63 = vadd.f32 %v888_v16, %v887_v12  ;;  %v900_v20 = vadd.f32 %v899_v17, %v898_v13  ;;  %v911_v21 = vadd.f32 %v910_v18, %v909_v14  ;;  %v1298_v12 = vld [vmem:[%s1822_s8] ss:$0 sm:$0xff] }
 0x29b   :  { %v920_v22 = vld [vmem:[#allocation2 + $0x8] sm:$0xff]  ;;  %v934_v61 = vadd.f32 %v1304_v47, %v933_v55  ;;  %v1476_v16 = vmov 16.0  }
 0x29c   :  { %v879_v23 = vadd.f32 %v878_v19, %v877_v15  ;;  %v890_v24 = vrot.slane %v889_v63, 2  ;;  %v901_v25 = vrot.slane %v900_v20, 2  ;;  %v912_v26 = vrot.slane %v911_v21, 2 }
 0x29d   :  { %v921_v27 = vmax.f32 %v920_v22, 0.0  ;;  %v936_v4 = vsel %vm935_vm9, %v1304_v47, %v934_v61  ;;  %1305 = vrcp.f32 %v1476_v16 }
 0x29e   :  { %v880_v28 = vrot.slane %v879_v23, 1  ;;  %v891_v29 = vadd.f32 %v890_v24, %v889_v63  ;;  %v902_v30 = vadd.f32 %v901_v25, %v900_v20  ;;  %v913_v31 = vadd.f32 %v912_v26, %v911_v21 }
 0x29f   :  { %v923_v36 = vsel %vm922_vm8, %v921_v27, 0.0  ;;  %v1026_v27 = vld [vmem:[%s1825_s11] sm:$0xff] }
 0x2a0   :  { %v881_v32 = vadd.f32 %v880_v28, %v879_v23  ;;  %v892_v33 = vrot.slane %v891_v29, 1  ;;  %v903_v34 = vrot.slane %v902_v30, 1  ;;  %v914_v35 = vrot.slane %v913_v31, 1  ;;  %1273 = vmatpush.xpose.msk.msrb.mxu3 %vm1027_vm14, %v1026_v27  ;;  %1134 = vmatpush.msra.mxu1 %v1026_v27 }
 0x2a1   :  { %v924_v45 = vrot.slane %v923_v36, 4  ;;  %v1054_v28 = vmul.f32 %v1026_v27, %v1026_v27 }
 0x2a2   :  { %v882_v38 = vmul.f32 %v881_v32, %v1669_v46  ;;  %v893_v39 = vadd.f32 %v892_v33, %v891_v29  ;;  %v904_v40 = vadd.f32 %v903_v34, %v902_v30  ;;  %v915_v41 = vadd.f32 %v914_v35, %v913_v31 }
 0x2a3   :  { %v925_v48 = vadd.f32 %v924_v45, %v923_v36  ;;  %v1306_v17 = vpop.eup %1305  ;;  %1275 = vmatpush.xpose.msk.msra.mxu0 %vm1027_vm14, %v1054_v28  ;;  %v1477_v31 = vmov 1.0  }
 0x2a4   :  { %883 = vst.msk [vmem:[#allocation2 + $0x28] sm:$0x1] %vm375_vm7, %v882_v38  ;;  %v894_v42 = vmul.f32 %v893_v39, %v1669_v46  ;;  %v905_v43 = vmul.f32 %v904_v40, %v1669_v46  ;;  %v916_v44 = vmul.f32 %v915_v41, %v1669_v46  ;;  %v990_v18 = vmul.f32 16.0, %v1306_v17  ;;  %v1299_v39 = vld [vmem:[%s1823_s9] ss:$0 sm:$0xff] }
 0x2a5   :  { %v926_v50 = vrot.slane %v925_v48, 2  ;;  %vm994_vm13 = vweird.f32 %v1306_v17 }
 0x2a6   :  { %895 = vst.msk [vmem:[#allocation2 + $0x29] sm:$0x1] %vm375_vm7, %v894_v42  ;;  %v991_v19 = vsub.f32 1.0, %v990_v18  ;;  %1276 = vmatmul.msk.f32.vlgmr.msra.gmra.mxu0 %vm1027_vm14, %v1477_v31  ;;  %v1300_v42 = vld [vmem:[%s1824_s10] ss:$0 sm:$0xff] }
 0x2a7   :  { %906 = vst.msk [vmem:[#allocation2 + $0x2a] sm:$0x1] %vm375_vm7, %v905_v43  ;;  %v927_v54 = vadd.f32 %v926_v50, %v925_v48 }
 0x2a8   :  { %917 = vst.msk [vmem:[#allocation2 + $0x2b] sm:$0x1] %vm375_vm7, %v916_v44  ;;  %v992_v63 = vmul.f32 %v1306_v17, %v991_v19  ;;  %vm1162_vm7 = vcmask 0  }
 0x2a9   :  { %v928_v59 = vrot.slane %v927_v54, 1 }
 0x2aa   :  { %v993_v20 = vadd.f32 %v1306_v17, %v992_v63 }
 0x2ab   :  { %v929_v1 = vadd.f32 %v928_v59, %v927_v54 }
 0x2ac   :  { %v995_v21 = vsel %vm994_vm13, %v1306_v17, %v993_v20 }
 0x2ad   :  { %v937_v6 = vmul.f32 %v936_v4, %v929_v1 }
 0x2af   :  { %v941_v52 = vld [vmem:[#allocation2 + $0x28] sm:$0xff]  ;;  %v939_v9 = vsel %vm938_vm10, %v937_v6, 0.0 }
 0x2b0   :  { %v942_v53 = vmax.f32 %v941_v52, 0.0 }
 0x2b2   :  { %v943_v56 = vsel %vm922_vm8, %v942_v53, 0.0 }
 0x2b3   :  { %v944_v57 = vrot.slane %v943_v56, 4 }
 0x2b5   :  { %v945_v58 = vadd.f32 %v944_v57, %v943_v56  ;;  %v1094_v56 = vand.u32 127, %v918_v60 }
 0x2b7   :  { %v946_v62 = vrot.slane %v945_v58, 2 }
 0x2b9   :  { %v947_v2 = vadd.f32 %v946_v62, %v945_v58 }
 0x2bb   :  { %v948_v5 = vrot.slane %v947_v2, 1 }
 0x2bd   :  { %v949_v7 = vadd.f32 %v948_v5, %v947_v2 }
 0x2bf   :  { %v950_v8 = vmul.f32 %v949_v7, %v936_v4 }
 0x2c1   :  { %v952_v10 = vsel %vm951_vm11, %v950_v8, 0.0 }
 0x2c2   :  { %v953_v11 = vadd.f32 %v952_v10, %v939_v9 }
 0x2c4   :  { %1272 = vmatmul.msk.f32.vlgmr.msrb.gmra.mxu2 %vm84_vm0, %v953_v11 }
 0x323   :  { %v1078_v48 = vpop.f32.mrf.mxu0 }
 0x324   :  { %v1087_v51 = vperm.slane %v1078_v48, 0 }
 0x347   :  { %v982_v13 = vpop.f32.mrf.mxu2 }
 0x348   :  { %v983_v14 = vadd.f32 %v1298_v12, %v982_v13 }
 0x34a   :  { %v986_v15 = vsel %vm985_vm12, %v983_v14, 0.0 }
 0x34b   :  { %987 = vadd.xlane.f32.xlu1 %v986_v15 }
 0x3be   :  { %v988_v22 = vpop.xlane.xlu1 %987 }
 0x3bf   :  { %v996_v23 = vmul.f32 %v995_v21, %v988_v22 }
 0x3c1   :  { %v997_v24 = vsub.f32 %v983_v14, %v996_v23 }
 0x3c3   :  { %v998_v25 = vmul.f32 %v997_v24, %v997_v24 }
 0x3c5   :  { %v999_v26 = vsel %vm985_vm12, %v998_v25, 0.0 }
 0x3c6   :  { %1000 = vadd.xlane.f32.xlu1 %v999_v26 }
 0x439   :  { %v1001_v29 = vpop.xlane.xlu1 %1000 }
 0x43a   :  { %v1002_v30 = vmul.f32 %v1001_v29, %v995_v21 }
 0x43c   :  { %v1003_v32 = vadd.f32 1e-05, %v1002_v30 }
 0x43e   :  { %1307 = vrsqrt.f32 %v1003_v32  ;;  %vm1010_vm0 = vweird.f32 %v1003_v32 }
 0x444   :  { %v1308_v33 = vpop.eup %1307 }
 0x445   :  { %v1005_v34 = vmul.f32 %v1308_v33, %v1003_v32  ;;  %vm1011_vm15 = vweird.f32 %v1308_v33 }
 0x446   :  { %vm1012_vm1 = vmor %vm1010_vm0, %vm1011_vm15 }
 0x447   :  { %v1006_v35 = vmul.f32 %v1308_v33, %v1005_v34 }
 0x449   :  { %v1007_v36 = vmul.f32 0.5, %v1006_v35  ;;  %v1481_v35 = vmov 32.0  }
 0x44b   :  { %v1008_v37 = vsub.f32 1.5, %v1007_v36 }
 0x44d   :  { %v1009_v38 = vmul.f32 %v1308_v33, %v1008_v37 }
 0x44f   :  { %v1013_v40 = vsel %vm1012_vm1, %v1308_v33, %v1009_v38 }
 0x450   :  { %v1014_v41 = vmul.f32 %v1013_v40, %v997_v24 }
 0x452   :  { %v1019_v43 = vmul.f32 %v1299_v39, %v1014_v41 }
 0x454   :  { %v1024_v44 = vadd.f32 %v1300_v42, %v1019_v43 }
 0x456   :  { %1274 = vmatmul.msk.f32.vlgmr.msrb.gmra.mxu3 %vm1027_vm14, %v1024_v44  ;;  %1025 = vst.msk [vmem:[#allocation9] sm:$0x3] %vm985_vm12, %v1024_v44  ;;  %v1081_v45 = vmul.f32 %v1024_v44, %v1024_v44 }
 0x457   :  { %1193 = dma.vmem_to_hbm [thread:$0]  %s1189_s18, 32, %s1191_s4, [#allocation6]  }
 0x458   :  { %v1082_v47 = vsel %vm985_vm12, %v1081_v45, 0.0 }
 0x459   :  { %1083 = vadd.xlane.f32.xlu2 %v1082_v47 }
 0x4cc   :  { %v1084_v52 = vpop.xlane.xlu2 %1083 }
 0x4d9   :  { %v1051_v49 = vpop.f32.mrf.mxu3 }
 0x4da   :  { %v1085_v50 = vmul.f32 2.0, %v1051_v49 }
 0x4dc   :  { %v1086_v53 = vsub.f32 %v1084_v52, %v1085_v50 }
 0x4de   :  { %v1088_v54 = vadd.f32 %v1087_v51, %v1086_v53 }
 0x4e0   :  { %v1090_v55 = vsel %vm1089_vm2, %v1088_v54, inf }
 0x4e1   :  { %1091 = vmin.xlane.f32.xlu2 %v1090_v55 }
 0x554   :  { %v1092_v57 = vpop.xlane.xlu2 %1091 }
 0x555   :  { %vm1095_vm3 = vcmp.eq.f32.partialorder %v1088_v54, %v1092_v57 }
 0x556   :  { %v1096_v59 = vsel %vm1095_vm3, %v1094_v56, 8 }
 0x557   :  { %v1097_v58 = vsel %vm1089_vm2, %v1096_v59, 2147483647 }
 0x558   :  { %v1099_v61 = vshra.s32 %v1097_v58, 16  ;;  %v1098_v1 = vand.u32 65535, %v1097_v58 }
 0x55a   :  { %v1101_v62 = vcvt.s32.f32 %v1099_v61  ;;  %v1100_v3 = vcvt.s32.f32 %v1098_v1 }
 0x55c   :  { %1102 = vmin.xlane.f32.xlu1 %v1101_v62 }
 0x5cf   :  { %v1103_v2 = vpop.xlane.xlu1 %1102 }
 0x5d0   :  { %vm1104_vm4 = vcmp.eq.f32.partialorder %v1101_v62, %v1103_v2  ;;  %v1109_v5 = vcvt.f32.s32 %v1103_v2 }
 0x5d1   :  { %v1105_v4 = vsel %vm1104_vm4, %v1100_v3, inf }
 0x5d2   :  { %1106 = vmin.xlane.f32.xlu2 %v1105_v4  ;;  %v1110_v7 = vshll.u32 %v1109_v5, 16 }
 0x645   :  { %v1107_v6 = vpop.xlane.xlu2 %1106 }
 0x646   :  { %v1108_v8 = vcvt.f32.s32 %v1107_v6 }
 0x648   :  { %v1111_v9 = vadd.s32 %v1110_v7, %v1108_v8 }
 0x64a   :  { %vm1112_vm6 = vcmp.eq.s32.totalorder %v1094_v56, %v1111_v9 }
 0x64b   :  { %v1277_v60 = vsel %vm1112_vm6, 1.0, %v1473_v0 }
 0x64c   :  { %v1164_v10 = vsel %vm1089_vm2, %v1277_v60, 0.0  ;;  %1278 = vmatmul.msk.f32.vlgmr.msra.gmra.mxu1 %vm1115_vm5, %v1277_v60 }
 0x64d   :  { %v1165_v11 = vrot.slane %v1164_v10, 4 }
 0x64f   :  { %v1166_v12 = vadd.f32 %v1165_v11, %v1164_v10 }
 0x651   :  { %v1167_v13 = vrot.slane %v1166_v12, 2 }
 0x653   :  { %v1168_v14 = vadd.f32 %v1167_v13, %v1166_v12 }
 0x655   :  { %v1169_v15 = vrot.slane %v1168_v14, 1 }
 0x657   :  { %v1170_v16 = vadd.f32 %v1169_v15, %v1168_v14 }
 0x659   :  { %v1171_v17 = vmul.f32 %v1170_v16, %v1669_v46 }
 0x65b   :  { %v1172_v18 = vadd.f32 1e-10, %v1171_v17 }
 0x65d   :  { %1309 = vlog2.f32 %v1172_v18 }
 0x663   :  { %v1310_v19 = vpop.eup %1309 }
 0x664   :  { %v1174_v63 = vmul.f32 0.6931472, %v1310_v19 }
 0x666   :  { %v1175_v20 = vmul.f32 %v1174_v63, %v1171_v17 }
 0x668   :  { %v1176_v21 = vsel %vm1115_vm5, %v1175_v20, 0.0 }
 0x669   :  { %1177 = vadd.xlane.f32.xlu1 %v1176_v21 }
 0x6c9   :  { %v1136_v0 = vpop.f32.mrf.mxu1 }
 0x6ca   :  { %1139 = vst.msk [vmem:[#allocation10] sm:$0x3] %vm985_vm12, %v1136_v0  ;;  %v1140_v22 = vsub.f32 %v1136_v0, %v1024_v44 }
 0x6cb   :  { %1204 = dma.vmem_to_hbm [thread:$0]  %s1200_s17, 32, %s1202_s16, [#allocation11]  }
 0x6cc   :  { %v1141_v23 = vmul.f32 %v1140_v22, %v1140_v22 }
 0x6ce   :  { %v1142_v24 = vsel %vm985_vm12, %v1141_v23, 0.0 }
 0x6cf   :  { %1143 = vadd.xlane.f32.xlu0 %v1142_v24 }
 0x6dc   :  { %v1178_v25 = vpop.xlane.xlu1 %1177 }
 0x6dd   :  { %v1179_v26 = vsub.f32 0.0, %v1178_v25 }
 0x6df   :  { %v1180_v27 = vmul.f32 1.442695, %v1179_v26 }
 0x6e1   :  { %1311 = vpow2.f32 %v1180_v27 }
 0x6e2   :  { %1313 = vrcp.f32 %v1481_v35 }
 0x6e7   :  { %v1312_v46 = vpop.eup %1311 }
 0x6e8   :  { %1182 = vst.msk [vmem:[#allocation13] sm:$0x1] %vm1162_vm7, %v1312_v46  ;;  %v1314_v36 = vpop.eup %1313 }
 0x6e9   :  { %1226 = dma.vmem_to_hbm [thread:$0]  %s1222_s6, 16, %s1224_s13, [#allocation14]   ;;  %v1154_v37 = vmul.f32 32.0, %v1314_v36  ;;  %vm1158_vm8 = vweird.f32 %v1314_v36 }
 0x6eb   :  { %v1155_v38 = vsub.f32 1.0, %v1154_v37 }
 0x6ed   :  { %v1156_v39 = vmul.f32 %v1314_v36, %v1155_v38 }
 0x6ef   :  { %v1157_v40 = vadd.f32 %v1314_v36, %v1156_v39 }
 0x6f1   :  { %v1159_v41 = vsel %vm1158_vm8, %v1314_v36, %v1157_v40 }
 0x742   :  { %v1144_v28 = vpop.xlane.xlu0 %1143 }
 0x743   :  { %v1145_v29 = vrot.slane %v1144_v28, 4 }
 0x745   :  { %v1146_v30 = vadd.f32 %v1145_v29, %v1144_v28 }
 0x747   :  { %v1147_v31 = vrot.slane %v1146_v30, 2 }
 0x749   :  { %v1148_v32 = vadd.f32 %v1147_v31, %v1146_v30 }
 0x74b   :  { %v1149_v33 = vrot.slane %v1148_v32, 1 }
 0x74d   :  { %v1150_v34 = vadd.f32 %v1149_v33, %v1148_v32 }
 0x74f   :  { %1279 = vpush %v1150_v34 }
 0x780   :  { %s1280_s12 = spop %1279 }
 0x781   :  { %v1152_v42 = vstv %s1280_s12 }
 0x782   :  { %v1160_v43 = vmul.f32 %v1159_v41, %v1152_v42 }
 0x784   :  { %v1161_v44 = vmul.f32 0.25, %v1160_v43 }
 0x786   :  { %1163 = vst.msk [vmem:[#allocation12] sm:$0x1] %vm1162_vm7, %v1161_v44 }
 0x787   :  { %1215 = dma.vmem_to_hbm [thread:$0]  %s1211_s23, 16, %s1213_s26, [#allocation11]  }
 0x788   :  { %1463 = dma.done.wait [#allocation6], 32  }
 0x789   :  { %1464 = vsyncadd [#allocation6], 4294967264 }
 0x78a   :  { %1465 = dma.done.wait [#allocation11], 48  }
 0x78b   :  { %1466 = vsyncadd [#allocation11], 4294967248 }
 0x78c   :  { %1467 = dma.done.wait [#allocation14], 16  }
 0x78d   :  { %1468 = vsyncadd [#allocation14], 4294967280 }
 0x78e   :  { %1243 = vsyncpa [#allocation5], 1 }
 0x78f   :  { %1244 = vsyncpa [#allocation8], 1 }
 0x790   :  { %1245 = vsyncpa [#allocation6], 1 }
 0x791   :  { %1246 = vsyncpa [#allocation11], 1 }
 0x792   :  { %1247 = vsyncpa [#allocation14], 1 }

</bundles_post_ra>
